<compile_context>
chip_gen: v6e
topology: v6e:2x2x1
jax: 0.10.0
libtpu: 0.0.40
codegen_flags: <defaults>
</compile_context>

<pallas_src>
import functools

import jax
import jax.numpy as jnp
from jax.experimental import pallas as pl
from jax.experimental.pallas import tpu as pltpu


def _round_up(x, m):
    return ((x + m - 1) // m) * m


def _gru_stack_kernel(unroll,
                      gi0_ref, w_ih_ref, b_ih_ref, w_hh_ref, b_hh_ref,
                      out_ref, h_ref):
    """One grid step == `tt` timesteps of the stacked GRU for one batch block.

    gi0_ref : (tt, bb, G)  precomputed layer-0 input gates  emb @ W_ih0 + b_ih0
    w_ih_ref: (Lr, H, G)   fused input->hidden weights for layers 1..L-1
    b_ih_ref: (Lr, 1, G)
    w_hh_ref: (L,  H, G)   fused hidden->hidden weights, all layers
    b_hh_ref: (L,  1, G)
    out_ref : (tt, bb, H)  top-layer hidden state per timestep (lane-dense)
    h_ref   : (L,  bb, H)  persistent stacked hidden state (VMEM scratch)

    Gate order along G: [r | z | n] (each H wide; G is 3H padded to 128 lanes).
    """
    num_layers, _, hidden = h_ref.shape
    tt = gi0_ref.shape[0]

    # time-chunk 0 of each batch block starts from a zero hidden state
    @pl.when(pl.program_id(1) == 0)
    def _():
        h_ref[...] = jnp.zeros_like(h_ref)

    hs0 = tuple(h_ref[l] for l in range(num_layers))

    def step(i, hs):
        hs = list(hs)
        x = None
        for l in range(num_layers):           # static, small layer count
            h_prev = hs[l]
            if l == 0:
                gi = gi0_ref[i]               # layer-0 x@W_ih hoisted out
            else:
                gi = (jnp.dot(x, w_ih_ref[l - 1],
                              preferred_element_type=jnp.float32)
                      + b_ih_ref[l - 1])
            gh = (jnp.dot(h_prev, w_hh_ref[l],
                          preferred_element_type=jnp.float32)
                  + b_hh_ref[l])
            r = jax.nn.sigmoid(gi[:, 0:hidden] + gh[:, 0:hidden])
            z = jax.nn.sigmoid(gi[:, hidden:2 * hidden]
                               + gh[:, hidden:2 * hidden])
            n = jnp.tanh(gi[:, 2 * hidden:3 * hidden]
                         + r * gh[:, 2 * hidden:3 * hidden])
            h_new = (1.0 - z) * n + z * h_prev
            hs[l] = h_new
            x = h_new
        out_ref[i] = x                        # (bb, H): H on the lane axis
        return tuple(hs)

    hs_final = jax.lax.fori_loop(0, tt, step, hs0, unroll=unroll)
    for l in range(num_layers):
        h_ref[l] = hs_final[l]


def discriminator_forward(tokens, params, *, t_chunk=32):
    """tokens: (B, T) int32. Returns (disc_logits (B,T), baseline (B,T))."""
    B, T = tokens.shape
    emb_tbl = params["embedding"]                       # (V, H)
    w_ih, w_hh = params["w_ih"], params["w_hh"]         # (L, 3, H, H) (in, out)
    b_ih, b_hh = params["b_ih"], params["b_hh"]         # (L, 3, 1, H)
    w_head, b_head = params["w_head"], params["b_head"]  # (H, 2), (1, 2)
    L, _, H, _ = w_ih.shape

    # --- fuse the 3 gate matrices along the output dim, pad to 128 lanes ----
    G = _round_up(3 * H, 128)

    def fuse(w):  # (L, 3, A, H) -> (L, A, 3H) -> (L, A, G)
        a = w.shape[2]
        f = jnp.transpose(w, (0, 2, 1, 3)).reshape(L, a, 3 * H)
        return jnp.pad(f, ((0, 0), (0, 0), (0, G - 3 * H)))

    w_ih_f, w_hh_f = fuse(w_ih), fuse(w_hh)             # (L, H, G)
    b_ih_f, b_hh_f = fuse(b_ih), fuse(b_hh)             # (L, 1, G)

    # --- batch / time padding + chunking ------------------------------------
    bb = 128 if B > 128 else _round_up(B, 8)            # batch block (sublanes)
    Bp = _round_up(B, bb)
    n_b = Bp // bb
    tt = min(T, t_chunk)                                # timesteps / grid step
    Tp = _round_up(T, tt)
    n_c = Tp // tt

    # --- hoist everything without a time dependence out of the kernel -------
    emb = emb_tbl[tokens]                               # (B, T, H) gather (XLA)
    emb_tb = jnp.transpose(emb, (1, 0, 2))              # (T, B, H) time-major
    emb_tb = jnp.pad(emb_tb, ((0, Tp - T), (0, Bp - B), (0, 0)))
    # layer-0 input->hidden projection: one big GEMM instead of T small ones
    gi0 = jnp.einsum('tbh,hg->tbg', emb_tb, w_ih_f[0]) + b_ih_f[0]  # (Tp,Bp,G)

    if L > 1:
        w_ih_rest, b_ih_rest = w_ih_f[1:], b_ih_f[1:]
    else:  # dummy (never read in the kernel) so block shapes stay non-empty
        w_ih_rest = jnp.zeros((1, H, G), jnp.float32)
        b_ih_rest = jnp.zeros((1, 1, G), jnp.float32)
    Lr = w_ih_rest.shape[0]

    kernel = functools.partial(_gru_stack_kernel, tt <= 16)

    hidden_tb = pl.pallas_call(
        kernel,
        out_shape=jax.ShapeDtypeStruct((Tp, Bp, H), jnp.float32),
        grid_spec=pltpu.PrefetchScalarGridSpec(
            num_scalar_prefetch=0,
            grid=(n_b, n_c),                  # (parallel batch, sequential time)
            in_specs=[
                pl.BlockSpec((tt, bb, G), lambda b, c: (c, b, 0)),
                pl.BlockSpec((Lr, H, G), lambda b, c: (0, 0, 0)),
                pl.BlockSpec((Lr, 1, G), lambda b, c: (0, 0, 0)),
                pl.BlockSpec((L, H, G), lambda b, c: (0, 0, 0)),
                pl.BlockSpec((L, 1, G), lambda b, c: (0, 0, 0)),
            ],
            out_specs=pl.BlockSpec((tt, bb, H), lambda b, c: (c, b, 0)),
            scratch_shapes=[pltpu.VMEM((L, bb, H), jnp.float32)],
        ),
        compiler_params=pltpu.CompilerParams(
            dimension_semantics=("parallel", "arbitrary")),
    )(gi0, w_ih_rest, b_ih_rest, w_hh_f, b_hh_f)

    # --- heads (N=2 GEMM) + baseline shift outside the kernel ---------------
    out_tb = hidden_tb[:T, :B]                                    # (T, B, H)
    heads = jnp.einsum('tbh,hc->tbc', out_tb, w_head) + b_head    # (T, B, 2)
    disc_logits = jnp.transpose(heads[..., 0], (1, 0))            # (B, T)
    crit_bt = jnp.transpose(heads[..., 1], (1, 0))                # (B, T)
    base0 = jnp.full((B, 1), jnp.log(jnp.float32(0.5)), dtype=jnp.float32)
    baseline = jnp.concatenate([base0, crit_bt], axis=1)[:, :-1]
    return disc_logits, baseline


def discriminator_reference(tokens, params):
    """Pure-JAX reference (lax.scan GRU) for correctness checking."""
    emb_tbl = params["embedding"]
    w_ih, w_hh = params["w_ih"], params["w_hh"]
    b_ih, b_hh = params["b_ih"], params["b_hh"]
    w_head, b_head = params["w_head"], params["b_head"]
    L = w_ih.shape[0]
    B, T = tokens.shape
    H = emb_tbl.shape[1]

    x = jnp.transpose(emb_tbl[tokens], (1, 0, 2))  # (T, B, H)
    for l in range(L):
        def step(h, xt, l=l):
            gi_r = xt @ w_ih[l, 0] + b_ih[l, 0]
            gi_z = xt @ w_ih[l, 1] + b_ih[l, 1]
            gi_n = xt @ w_ih[l, 2] + b_ih[l, 2]
            gh_r = h @ w_hh[l, 0] + b_hh[l, 0]
            gh_z = h @ w_hh[l, 1] + b_hh[l, 1]
            gh_n = h @ w_hh[l, 2] + b_hh[l, 2]
            r = jax.nn.sigmoid(gi_r + gh_r)
            z = jax.nn.sigmoid(gi_z + gh_z)
            n = jnp.tanh(gi_n + r * gh_n)
            h_new = (1.0 - z) * n + z * h
            return h_new, h_new
        _, x = jax.lax.scan(step, jnp.zeros((B, H), jnp.float32), x)

    heads = x @ w_head + b_head                     # (T, B, 2)
    disc = jnp.transpose(heads[..., 0], (1, 0))     # (B, T)
    crit = jnp.transpose(heads[..., 1], (1, 0))     # (B, T)
    base0 = jnp.full((B, 1), jnp.log(jnp.float32(0.5)), dtype=jnp.float32)
    baseline = jnp.concatenate([base0, crit], axis=1)[:, :-1]
    return disc, baseline


def init_params(key, vocab_size, hidden_dim, num_layers):
    ks = jax.random.split(key, 7)
    s = 0.1
    return {
        "embedding": s * jax.random.normal(ks[0], (vocab_size, hidden_dim), jnp.float32),
        # stored as (in, out): y = x @ W + b  (== PyTorch x @ W_ih.T with W_ih = W.T)
        "w_ih": s * jax.random.normal(ks[1], (num_layers, 3, hidden_dim, hidden_dim), jnp.float32),
        "w_hh": s * jax.random.normal(ks[2], (num_layers, 3, hidden_dim, hidden_dim), jnp.float32),
        "b_ih": s * jax.random.normal(ks[3], (num_layers, 3, 1, hidden_dim), jnp.float32),
        "b_hh": s * jax.random.normal(ks[4], (num_layers, 3, 1, hidden_dim), jnp.float32),
        # column 0: output_layer(H,1); column 1: critic(H,1)
        "w_head": s * jax.random.normal(ks[5], (hidden_dim, 2), jnp.float32),
        "b_head": s * jax.random.normal(ks[6], (1, 2), jnp.float32),
    }


if __name__ == "__main__":
    VOCAB, HIDDEN, LAYERS = 16, 32, 2
    B, T = 4, 8

    key = jax.random.PRNGKey(0)
    k_tok, k_par = jax.random.split(key)
    params = init_params(k_par, VOCAB, HIDDEN, LAYERS)
    tokens = jax.random.randint(k_tok, (B, T), 0, VOCAB, dtype=jnp.int32)

    disc, baseline = jax.jit(discriminator_forward)(tokens, params)
    disc = jax.block_until_ready(disc)
    baseline = jax.block_until_ready(baseline)

    disc_ref, baseline_ref = jax.jit(discriminator_reference)(tokens, params)
    disc_ref = jax.block_until_ready(disc_ref)
    baseline_ref = jax.block_until_ready(baseline_ref)

    assert disc.shape == (B, T) and baseline.shape == (B, T)
    assert jnp.allclose(disc, disc_ref, atol=1e-4, rtol=1e-4)
    assert jnp.allclose(baseline, baseline_ref, atol=1e-4, rtol=1e-4)

    print("KERNEL_OK")
</pallas_src>

<mosaic_0001>
module attributes {stable_mosaic.version = 11 : i64} {
  func.func @_gru_stack_kernel(%arg0: i32, %arg1: i32, %arg2: memref<8x8x128xf32, #tpu.memory_space<vmem>>, %arg3: memref<1x32x128xf32, #tpu.memory_space<vmem>>, %arg4: memref<1x1x128xf32, #tpu.memory_space<vmem>>, %arg5: memref<2x32x128xf32, #tpu.memory_space<vmem>>, %arg6: memref<2x1x128xf32, #tpu.memory_space<vmem>>, %arg7: memref<8x8x32xf32, #tpu.memory_space<vmem>>, %arg8: memref<2x8x32xf32, #tpu.memory_space<vmem>>) attributes {dimension_semantics = [#tpu.dimension_semantics<parallel>, #tpu.dimension_semantics<arbitrary>], iteration_bounds = array<i64: 1, 1>, scalar_prefetch = 0 : i64, scratch_operands = 1 : i64, tpu.core_type = #tpu.core_type<tc>, window_params = [{transform_indices = @transform_0, window_bounds = array<i64: 8, 8, 128>}, {pipeline_mode = #tpu.pipeline_mode<synchronous>, transform_indices = @transform_1, window_bounds = array<i64: 1, 32, 128>}, {pipeline_mode = #tpu.pipeline_mode<synchronous>, transform_indices = @transform_2, window_bounds = array<i64: 1, 1, 128>}, {pipeline_mode = #tpu.pipeline_mode<synchronous>, transform_indices = @transform_3, window_bounds = array<i64: 2, 32, 128>}, {pipeline_mode = #tpu.pipeline_mode<synchronous>, transform_indices = @transform_4, window_bounds = array<i64: 2, 1, 128>}, {transform_indices = @transform_5, window_bounds = array<i64: 8, 8, 32>}]} {
    %c0_i32 = arith.constant 0 : i32
    %0 = arith.cmpi eq, %arg1, %c0_i32 : i32
    %1 = arith.extui %0 : i1 to i32
    %c0_i32_0 = arith.constant 0 : i32
    %2 = arith.cmpi ne, %1, %c0_i32_0 : i32
    scf.if %2 {
      %cst_259 = arith.constant 0.000000e+00 : f32
      %653 = vector.broadcast %cst_259 : f32 to vector<2x8x32xf32>
      %c0_260 = arith.constant 0 : index
      %c0_261 = arith.constant 0 : index
      %c0_262 = arith.constant 0 : index
      %654 = vector.load %arg8[%c0_260, %c0_261, %c0_262] : memref<2x8x32xf32, #tpu.memory_space<vmem>>, vector<2x8x32xf32>
      tpu.vector_store %arg8[%c0_260, %c0_261, %c0_262], %653 {strides = array<i32>} : memref<2x8x32xf32, #tpu.memory_space<vmem>>, vector<2x8x32xf32>,
    } else {
    }
    %c0 = arith.constant 0 : index
    %c0_1 = arith.constant 0 : index
    %c0_2 = arith.constant 0 : index
    %3 = vector.load %arg8[%c0, %c0_1, %c0_2] : memref<2x8x32xf32, #tpu.memory_space<vmem>>, vector<1x8x32xf32>
    %4 = vector.shape_cast %3 : vector<1x8x32xf32> to vector<8x32xf32>
    %c1 = arith.constant 1 : index
    %c0_3 = arith.constant 0 : index
    %c0_4 = arith.constant 0 : index
    %5 = vector.load %arg8[%c1, %c0_3, %c0_4] : memref<2x8x32xf32, #tpu.memory_space<vmem>>, vector<1x8x32xf32>
    %6 = vector.shape_cast %5 : vector<1x8x32xf32> to vector<8x32xf32>
    %c0_i32_5 = arith.constant 0 : i32
    %7 = arith.index_cast %c0_i32_5 : i32 to index
    %c0_6 = arith.constant 0 : index
    %c0_7 = arith.constant 0 : index
    %8 = vector.load %arg2[%7, %c0_6, %c0_7] : memref<8x8x128xf32, #tpu.memory_space<vmem>>, vector<1x8x128xf32>
    %9 = vector.shape_cast %8 : vector<1x8x128xf32> to vector<8x128xf32>
    %c0_8 = arith.constant 0 : index
    %c0_9 = arith.constant 0 : index
    %c0_10 = arith.constant 0 : index
    %10 = vector.load %arg5[%c0_8, %c0_9, %c0_10] : memref<2x32x128xf32, #tpu.memory_space<vmem>>, vector<1x32x128xf32>
    %11 = vector.shape_cast %10 : vector<1x32x128xf32> to vector<32x128xf32>
    %cst = arith.constant dense<0.000000e+00> : vector<8x128xf32>
    %12 = tpu.matmul %4, %11, %cst {dimension_numbers = #tpu.dot_dimension_numbers<[1], [0], [0], [1], [0, 0, 1, 1], [], []>} : vector<8x32xf32>, vector<32x128xf32>, vector<8x128xf32> -> vector<8x128xf32>
    %c0_11 = arith.constant 0 : index
    %c0_12 = arith.constant 0 : index
    %c0_13 = arith.constant 0 : index
    %13 = vector.load %arg6[%c0_11, %c0_12, %c0_13] : memref<2x1x128xf32, #tpu.memory_space<vmem>>, vector<1x1x128xf32>
    %14 = vector.shape_cast %13 : vector<1x1x128xf32> to vector<1x128xf32>
    %15 = vector.broadcast %14 : vector<1x128xf32> to vector<8x128xf32>
    %16 = arith.addf %12, %15 : vector<8x128xf32>
    %17 = vector.extract_strided_slice %9 {offsets = [0, 0], sizes = [8, 32], strides = [1, 1]} : vector<8x128xf32> to vector<8x32xf32>
    %18 = vector.extract_strided_slice %16 {offsets = [0, 0], sizes = [8, 32], strides = [1, 1]} : vector<8x128xf32> to vector<8x32xf32>
    %19 = arith.addf %17, %18 : vector<8x32xf32>
    %20 = arith.negf %19 : vector<8x32xf32>
    %21 = math.exp %20 : vector<8x32xf32>
    %cst_14 = arith.constant 1.000000e+00 : f32
    %22 = vector.broadcast %cst_14 : f32 to vector<8x32xf32>
    %23 = arith.addf %22, %21 : vector<8x32xf32>
    %24 = arith.divf %22, %23 : vector<8x32xf32>
    %25 = vector.extract_strided_slice %9 {offsets = [0, 32], sizes = [8, 32], strides = [1, 1]} : vector<8x128xf32> to vector<8x32xf32>
    %26 = vector.extract_strided_slice %16 {offsets = [0, 32], sizes = [8, 32], strides = [1, 1]} : vector<8x128xf32> to vector<8x32xf32>
    %27 = arith.addf %25, %26 : vector<8x32xf32>
    %28 = arith.negf %27 : vector<8x32xf32>
    %29 = math.exp %28 : vector<8x32xf32>
    %cst_15 = arith.constant 1.000000e+00 : f32
    %30 = vector.broadcast %cst_15 : f32 to vector<8x32xf32>
    %31 = arith.addf %30, %29 : vector<8x32xf32>
    %32 = arith.divf %30, %31 : vector<8x32xf32>
    %33 = vector.extract_strided_slice %9 {offsets = [0, 64], sizes = [8, 32], strides = [1, 1]} : vector<8x128xf32> to vector<8x32xf32>
    %34 = vector.extract_strided_slice %16 {offsets = [0, 64], sizes = [8, 32], strides = [1, 1]} : vector<8x128xf32> to vector<8x32xf32>
    %35 = arith.mulf %24, %34 : vector<8x32xf32>
    %36 = arith.addf %33, %35 : vector<8x32xf32>
    %37 = math.tanh %36 : vector<8x32xf32>
    %cst_16 = arith.constant 1.000000e+00 : f32
    %38 = vector.broadcast %cst_16 : f32 to vector<8x32xf32>
    %39 = arith.subf %38, %32 : vector<8x32xf32>
    %40 = arith.mulf %39, %37 : vector<8x32xf32>
    %41 = arith.mulf %32, %4 : vector<8x32xf32>
    %42 = arith.addf %40, %41 : vector<8x32xf32>
    %c0_17 = arith.constant 0 : index
    %c0_18 = arith.constant 0 : index
    %c0_19 = arith.constant 0 : index
    %43 = vector.load %arg3[%c0_17, %c0_18, %c0_19] : memref<1x32x128xf32, #tpu.memory_space<vmem>>, vector<1x32x128xf32>
    %44 = vector.shape_cast %43 : vector<1x32x128xf32> to vector<32x128xf32>
    %cst_20 = arith.constant dense<0.000000e+00> : vector<8x128xf32>
    %45 = tpu.matmul %42, %44, %cst_20 {dimension_numbers = #tpu.dot_dimension_numbers<[1], [0], [0], [1], [0, 0, 1, 1], [], []>} : vector<8x32xf32>, vector<32x128xf32>, vector<8x128xf32> -> vector<8x128xf32>
    %c0_21 = arith.constant 0 : index
    %c0_22 = arith.constant 0 : index
    %c0_23 = arith.constant 0 : index
    %46 = vector.load %arg4[%c0_21, %c0_22, %c0_23] : memref<1x1x128xf32, #tpu.memory_space<vmem>>, vector<1x1x128xf32>
    %47 = vector.shape_cast %46 : vector<1x1x128xf32> to vector<1x128xf32>
    %48 = vector.broadcast %47 : vector<1x128xf32> to vector<8x128xf32>
    %49 = arith.addf %45, %48 : vector<8x128xf32>
    %c1_24 = arith.constant 1 : index
    %c0_25 = arith.constant 0 : index
    %c0_26 = arith.constant 0 : index
    %50 = vector.load %arg5[%c1_24, %c0_25, %c0_26] : memref<2x32x128xf32, #tpu.memory_space<vmem>>, vector<1x32x128xf32>
    %51 = vector.shape_cast %50 : vector<1x32x128xf32> to vector<32x128xf32>
    %cst_27 = arith.constant dense<0.000000e+00> : vector<8x128xf32>
    %52 = tpu.matmul %6, %51, %cst_27 {dimension_numbers = #tpu.dot_dimension_numbers<[1], [0], [0], [1], [0, 0, 1, 1], [], []>} : vector<8x32xf32>, vector<32x128xf32>, vector<8x128xf32> -> vector<8x128xf32>
    %c1_28 = arith.constant 1 : index
    %c0_29 = arith.constant 0 : index
    %c0_30 = arith.constant 0 : index
    %53 = vector.load %arg6[%c1_28, %c0_29, %c0_30] : memref<2x1x128xf32, #tpu.memory_space<vmem>>, vector<1x1x128xf32>
    %54 = vector.shape_cast %53 : vector<1x1x128xf32> to vector<1x128xf32>
    %55 = vector.broadcast %54 : vector<1x128xf32> to vector<8x128xf32>
    %56 = arith.addf %52, %55 : vector<8x128xf32>
    %57 = vector.extract_strided_slice %49 {offsets = [0, 0], sizes = [8, 32], strides = [1, 1]} : vector<8x128xf32> to vector<8x32xf32>
    %58 = vector.extract_strided_slice %56 {offsets = [0, 0], sizes = [8, 32], strides = [1, 1]} : vector<8x128xf32> to vector<8x32xf32>
    %59 = arith.addf %57, %58 : vector<8x32xf32>
    %60 = arith.negf %59 : vector<8x32xf32>
    %61 = math.exp %60 : vector<8x32xf32>
    %cst_31 = arith.constant 1.000000e+00 : f32
    %62 = vector.broadcast %cst_31 : f32 to vector<8x32xf32>
    %63 = arith.addf %62, %61 : vector<8x32xf32>
    %64 = arith.divf %62, %63 : vector<8x32xf32>
    %65 = vector.extract_strided_slice %49 {offsets = [0, 32], sizes = [8, 32], strides = [1, 1]} : vector<8x128xf32> to vector<8x32xf32>
    %66 = vector.extract_strided_slice %56 {offsets = [0, 32], sizes = [8, 32], strides = [1, 1]} : vector<8x128xf32> to vector<8x32xf32>
    %67 = arith.addf %65, %66 : vector<8x32xf32>
    %68 = arith.negf %67 : vector<8x32xf32>
    %69 = math.exp %68 : vector<8x32xf32>
    %cst_32 = arith.constant 1.000000e+00 : f32
    %70 = vector.broadcast %cst_32 : f32 to vector<8x32xf32>
    %71 = arith.addf %70, %69 : vector<8x32xf32>
    %72 = arith.divf %70, %71 : vector<8x32xf32>
    %73 = vector.extract_strided_slice %49 {offsets = [0, 64], sizes = [8, 32], strides = [1, 1]} : vector<8x128xf32> to vector<8x32xf32>
    %74 = vector.extract_strided_slice %56 {offsets = [0, 64], sizes = [8, 32], strides = [1, 1]} : vector<8x128xf32> to vector<8x32xf32>
    %75 = arith.mulf %64, %74 : vector<8x32xf32>
    %76 = arith.addf %73, %75 : vector<8x32xf32>
    %77 = math.tanh %76 : vector<8x32xf32>
    %cst_33 = arith.constant 1.000000e+00 : f32
    %78 = vector.broadcast %cst_33 : f32 to vector<8x32xf32>
    %79 = arith.subf %78, %72 : vector<8x32xf32>
    %80 = arith.mulf %79, %77 : vector<8x32xf32>
    %81 = arith.mulf %72, %6 : vector<8x32xf32>
    %82 = arith.addf %80, %81 : vector<8x32xf32>
    %83 = arith.index_cast %c0_i32_5 : i32 to index
    %c0_34 = arith.constant 0 : index
    %c0_35 = arith.constant 0 : index
    %84 = vector.load %arg7[%83, %c0_34, %c0_35] : memref<8x8x32xf32, #tpu.memory_space<vmem>>, vector<1x8x32xf32>
    %85 = vector.shape_cast %84 : vector<1x8x32xf32> to vector<8x32xf32>
    %86 = vector.shape_cast %82 : vector<8x32xf32> to vector<1x8x32xf32>
    tpu.vector_store %arg7[%83, %c0_34, %c0_35], %86 {strides = array<i32>} : memref<8x8x32xf32, #tpu.memory_space<vmem>>, vector<1x8x32xf32>,
    %c1_i32 = arith.constant 1 : i32
    %87 = arith.index_cast %c1_i32 : i32 to index
    %c0_36 = arith.constant 0 : index
    %c0_37 = arith.constant 0 : index
    %88 = vector.load %arg2[%87, %c0_36, %c0_37] : memref<8x8x128xf32, #tpu.memory_space<vmem>>, vector<1x8x128xf32>
    %89 = vector.shape_cast %88 : vector<1x8x128xf32> to vector<8x128xf32>
    %c0_38 = arith.constant 0 : index
    %c0_39 = arith.constant 0 : index
    %c0_40 = arith.constant 0 : index
    %90 = vector.load %arg5[%c0_38, %c0_39, %c0_40] : memref<2x32x128xf32, #tpu.memory_space<vmem>>, vector<1x32x128xf32>
    %91 = vector.shape_cast %90 : vector<1x32x128xf32> to vector<32x128xf32>
    %cst_41 = arith.constant dense<0.000000e+00> : vector<8x128xf32>
    %92 = tpu.matmul %42, %91, %cst_41 {dimension_numbers = #tpu.dot_dimension_numbers<[1], [0], [0], [1], [0, 0, 1, 1], [], []>} : vector<8x32xf32>, vector<32x128xf32>, vector<8x128xf32> -> vector<8x128xf32>
    %c0_42 = arith.constant 0 : index
    %c0_43 = arith.constant 0 : index
    %c0_44 = arith.constant 0 : index
    %93 = vector.load %arg6[%c0_42, %c0_43, %c0_44] : memref<2x1x128xf32, #tpu.memory_space<vmem>>, vector<1x1x128xf32>
    %94 = vector.shape_cast %93 : vector<1x1x128xf32> to vector<1x128xf32>
    %95 = vector.broadcast %94 : vector<1x128xf32> to vector<8x128xf32>
    %96 = arith.addf %92, %95 : vector<8x128xf32>
    %97 = vector.extract_strided_slice %89 {offsets = [0, 0], sizes = [8, 32], strides = [1, 1]} : vector<8x128xf32> to vector<8x32xf32>
    %98 = vector.extract_strided_slice %96 {offsets = [0, 0], sizes = [8, 32], strides = [1, 1]} : vector<8x128xf32> to vector<8x32xf32>
    %99 = arith.addf %97, %98 : vector<8x32xf32>
    %100 = arith.negf %99 : vector<8x32xf32>
    %101 = math.exp %100 : vector<8x32xf32>
    %cst_45 = arith.constant 1.000000e+00 : f32
    %102 = vector.broadcast %cst_45 : f32 to vector<8x32xf32>
    %103 = arith.addf %102, %101 : vector<8x32xf32>
    %104 = arith.divf %102, %103 : vector<8x32xf32>
    %105 = vector.extract_strided_slice %89 {offsets = [0, 32], sizes = [8, 32], strides = [1, 1]} : vector<8x128xf32> to vector<8x32xf32>
    %106 = vector.extract_strided_slice %96 {offsets = [0, 32], sizes = [8, 32], strides = [1, 1]} : vector<8x128xf32> to vector<8x32xf32>
    %107 = arith.addf %105, %106 : vector<8x32xf32>
    %108 = arith.negf %107 : vector<8x32xf32>
    %109 = math.exp %108 : vector<8x32xf32>
    %cst_46 = arith.constant 1.000000e+00 : f32
    %110 = vector.broadcast %cst_46 : f32 to vector<8x32xf32>
    %111 = arith.addf %110, %109 : vector<8x32xf32>
    %112 = arith.divf %110, %111 : vector<8x32xf32>
    %113 = vector.extract_strided_slice %89 {offsets = [0, 64], sizes = [8, 32], strides = [1, 1]} : vector<8x128xf32> to vector<8x32xf32>
    %114 = vector.extract_strided_slice %96 {offsets = [0, 64], sizes = [8, 32], strides = [1, 1]} : vector<8x128xf32> to vector<8x32xf32>
    %115 = arith.mulf %104, %114 : vector<8x32xf32>
    %116 = arith.addf %113, %115 : vector<8x32xf32>
    %117 = math.tanh %116 : vector<8x32xf32>
    %cst_47 = arith.constant 1.000000e+00 : f32
    %118 = vector.broadcast %cst_47 : f32 to vector<8x32xf32>
    %119 = arith.subf %118, %112 : vector<8x32xf32>
    %120 = arith.mulf %119, %117 : vector<8x32xf32>
    %121 = arith.mulf %112, %42 : vector<8x32xf32>
    %122 = arith.addf %120, %121 : vector<8x32xf32>
    %c0_48 = arith.constant 0 : index
    %c0_49 = arith.constant 0 : index
    %c0_50 = arith.constant 0 : index
    %123 = vector.load %arg3[%c0_48, %c0_49, %c0_50] : memref<1x32x128xf32, #tpu.memory_space<vmem>>, vector<1x32x128xf32>
    %124 = vector.shape_cast %123 : vector<1x32x128xf32> to vector<32x128xf32>
    %cst_51 = arith.constant dense<0.000000e+00> : vector<8x128xf32>
    %125 = tpu.matmul %122, %124, %cst_51 {dimension_numbers = #tpu.dot_dimension_numbers<[1], [0], [0], [1], [0, 0, 1, 1], [], []>} : vector<8x32xf32>, vector<32x128xf32>, vector<8x128xf32> -> vector<8x128xf32>
    %c0_52 = arith.constant 0 : index
    %c0_53 = arith.constant 0 : index
    %c0_54 = arith.constant 0 : index
    %126 = vector.load %arg4[%c0_52, %c0_53, %c0_54] : memref<1x1x128xf32, #tpu.memory_space<vmem>>, vector<1x1x128xf32>
    %127 = vector.shape_cast %126 : vector<1x1x128xf32> to vector<1x128xf32>
    %128 = vector.broadcast %127 : vector<1x128xf32> to vector<8x128xf32>
    %129 = arith.addf %125, %128 : vector<8x128xf32>
    %c1_55 = arith.constant 1 : index
    %c0_56 = arith.constant 0 : index
    %c0_57 = arith.constant 0 : index
    %130 = vector.load %arg5[%c1_55, %c0_56, %c0_57] : memref<2x32x128xf32, #tpu.memory_space<vmem>>, vector<1x32x128xf32>
    %131 = vector.shape_cast %130 : vector<1x32x128xf32> to vector<32x128xf32>
    %cst_58 = arith.constant dense<0.000000e+00> : vector<8x128xf32>
    %132 = tpu.matmul %82, %131, %cst_58 {dimension_numbers = #tpu.dot_dimension_numbers<[1], [0], [0], [1], [0, 0, 1, 1], [], []>} : vector<8x32xf32>, vector<32x128xf32>, vector<8x128xf32> -> vector<8x128xf32>
    %c1_59 = arith.constant 1 : index
    %c0_60 = arith.constant 0 : index
    %c0_61 = arith.constant 0 : index
    %133 = vector.load %arg6[%c1_59, %c0_60, %c0_61] : memref<2x1x128xf32, #tpu.memory_space<vmem>>, vector<1x1x128xf32>
    %134 = vector.shape_cast %133 : vector<1x1x128xf32> to vector<1x128xf32>
    %135 = vector.broadcast %134 : vector<1x128xf32> to vector<8x128xf32>
    %136 = arith.addf %132, %135 : vector<8x128xf32>
    %137 = vector.extract_strided_slice %129 {offsets = [0, 0], sizes = [8, 32], strides = [1, 1]} : vector<8x128xf32> to vector<8x32xf32>
    %138 = vector.extract_strided_slice %136 {offsets = [0, 0], sizes = [8, 32], strides = [1, 1]} : vector<8x128xf32> to vector<8x32xf32>
    %139 = arith.addf %137, %138 : vector<8x32xf32>
    %140 = arith.negf %139 : vector<8x32xf32>
    %141 = math.exp %140 : vector<8x32xf32>
    %cst_62 = arith.constant 1.000000e+00 : f32
    %142 = vector.broadcast %cst_62 : f32 to vector<8x32xf32>
    %143 = arith.addf %142, %141 : vector<8x32xf32>
    %144 = arith.divf %142, %143 : vector<8x32xf32>
    %145 = vector.extract_strided_slice %129 {offsets = [0, 32], sizes = [8, 32], strides = [1, 1]} : vector<8x128xf32> to vector<8x32xf32>
    %146 = vector.extract_strided_slice %136 {offsets = [0, 32], sizes = [8, 32], strides = [1, 1]} : vector<8x128xf32> to vector<8x32xf32>
    %147 = arith.addf %145, %146 : vector<8x32xf32>
    %148 = arith.negf %147 : vector<8x32xf32>
    %149 = math.exp %148 : vector<8x32xf32>
    %cst_63 = arith.constant 1.000000e+00 : f32
    %150 = vector.broadcast %cst_63 : f32 to vector<8x32xf32>
    %151 = arith.addf %150, %149 : vector<8x32xf32>
    %152 = arith.divf %150, %151 : vector<8x32xf32>
    %153 = vector.extract_strided_slice %129 {offsets = [0, 64], sizes = [8, 32], strides = [1, 1]} : vector<8x128xf32> to vector<8x32xf32>
    %154 = vector.extract_strided_slice %136 {offsets = [0, 64], sizes = [8, 32], strides = [1, 1]} : vector<8x128xf32> to vector<8x32xf32>
    %155 = arith.mulf %144, %154 : vector<8x32xf32>
    %156 = arith.addf %153, %155 : vector<8x32xf32>
    %157 = math.tanh %156 : vector<8x32xf32>
    %cst_64 = arith.constant 1.000000e+00 : f32
    %158 = vector.broadcast %cst_64 : f32 to vector<8x32xf32>
    %159 = arith.subf %158, %152 : vector<8x32xf32>
    %160 = arith.mulf %159, %157 : vector<8x32xf32>
    %161 = arith.mulf %152, %82 : vector<8x32xf32>
    %162 = arith.addf %160, %161 : vector<8x32xf32>
    %163 = arith.index_cast %c1_i32 : i32 to index
    %c0_65 = arith.constant 0 : index
    %c0_66 = arith.constant 0 : index
    %164 = vector.load %arg7[%163, %c0_65, %c0_66] : memref<8x8x32xf32, #tpu.memory_space<vmem>>, vector<1x8x32xf32>
    %165 = vector.shape_cast %164 : vector<1x8x32xf32> to vector<8x32xf32>
    %166 = vector.shape_cast %162 : vector<8x32xf32> to vector<1x8x32xf32>
    tpu.vector_store %arg7[%163, %c0_65, %c0_66], %166 {strides = array<i32>} : memref<8x8x32xf32, #tpu.memory_space<vmem>>, vector<1x8x32xf32>,
    %c2_i32 = arith.constant 2 : i32
    %167 = arith.index_cast %c2_i32 : i32 to index
    %c0_67 = arith.constant 0 : index
    %c0_68 = arith.constant 0 : index
    %168 = vector.load %arg2[%167, %c0_67, %c0_68] : memref<8x8x128xf32, #tpu.memory_space<vmem>>, vector<1x8x128xf32>
    %169 = vector.shape_cast %168 : vector<1x8x128xf32> to vector<8x128xf32>
    %c0_69 = arith.constant 0 : index
    %c0_70 = arith.constant 0 : index
    %c0_71 = arith.constant 0 : index
    %170 = vector.load %arg5[%c0_69, %c0_70, %c0_71] : memref<2x32x128xf32, #tpu.memory_space<vmem>>, vector<1x32x128xf32>
    %171 = vector.shape_cast %170 : vector<1x32x128xf32> to vector<32x128xf32>
    %cst_72 = arith.constant dense<0.000000e+00> : vector<8x128xf32>
    %172 = tpu.matmul %122, %171, %cst_72 {dimension_numbers = #tpu.dot_dimension_numbers<[1], [0], [0], [1], [0, 0, 1, 1], [], []>} : vector<8x32xf32>, vector<32x128xf32>, vector<8x128xf32> -> vector<8x128xf32>
    %c0_73 = arith.constant 0 : index
    %c0_74 = arith.constant 0 : index
    %c0_75 = arith.constant 0 : index
    %173 = vector.load %arg6[%c0_73, %c0_74, %c0_75] : memref<2x1x128xf32, #tpu.memory_space<vmem>>, vector<1x1x128xf32>
    %174 = vector.shape_cast %173 : vector<1x1x128xf32> to vector<1x128xf32>
    %175 = vector.broadcast %174 : vector<1x128xf32> to vector<8x128xf32>
    %176 = arith.addf %172, %175 : vector<8x128xf32>
    %177 = vector.extract_strided_slice %169 {offsets = [0, 0], sizes = [8, 32], strides = [1, 1]} : vector<8x128xf32> to vector<8x32xf32>
    %178 = vector.extract_strided_slice %176 {offsets = [0, 0], sizes = [8, 32], strides = [1, 1]} : vector<8x128xf32> to vector<8x32xf32>
    %179 = arith.addf %177, %178 : vector<8x32xf32>
    %180 = arith.negf %179 : vector<8x32xf32>
    %181 = math.exp %180 : vector<8x32xf32>
    %cst_76 = arith.constant 1.000000e+00 : f32
    %182 = vector.broadcast %cst_76 : f32 to vector<8x32xf32>
    %183 = arith.addf %182, %181 : vector<8x32xf32>
    %184 = arith.divf %182, %183 : vector<8x32xf32>
    %185 = vector.extract_strided_slice %169 {offsets = [0, 32], sizes = [8, 32], strides = [1, 1]} : vector<8x128xf32> to vector<8x32xf32>
    %186 = vector.extract_strided_slice %176 {offsets = [0, 32], sizes = [8, 32], strides = [1, 1]} : vector<8x128xf32> to vector<8x32xf32>
    %187 = arith.addf %185, %186 : vector<8x32xf32>
    %188 = arith.negf %187 : vector<8x32xf32>
    %189 = math.exp %188 : vector<8x32xf32>
    %cst_77 = arith.constant 1.000000e+00 : f32
    %190 = vector.broadcast %cst_77 : f32 to vector<8x32xf32>
    %191 = arith.addf %190, %189 : vector<8x32xf32>
    %192 = arith.divf %190, %191 : vector<8x32xf32>
    %193 = vector.extract_strided_slice %169 {offsets = [0, 64], sizes = [8, 32], strides = [1, 1]} : vector<8x128xf32> to vector<8x32xf32>
    %194 = vector.extract_strided_slice %176 {offsets = [0, 64], sizes = [8, 32], strides = [1, 1]} : vector<8x128xf32> to vector<8x32xf32>
    %195 = arith.mulf %184, %194 : vector<8x32xf32>
    %196 = arith.addf %193, %195 : vector<8x32xf32>
    %197 = math.tanh %196 : vector<8x32xf32>
    %cst_78 = arith.constant 1.000000e+00 : f32
    %198 = vector.broadcast %cst_78 : f32 to vector<8x32xf32>
    %199 = arith.subf %198, %192 : vector<8x32xf32>
    %200 = arith.mulf %199, %197 : vector<8x32xf32>
    %201 = arith.mulf %192, %122 : vector<8x32xf32>
    %202 = arith.addf %200, %201 : vector<8x32xf32>
    %c0_79 = arith.constant 0 : index
    %c0_80 = arith.constant 0 : index
    %c0_81 = arith.constant 0 : index
    %203 = vector.load %arg3[%c0_79, %c0_80, %c0_81] : memref<1x32x128xf32, #tpu.memory_space<vmem>>, vector<1x32x128xf32>
    %204 = vector.shape_cast %203 : vector<1x32x128xf32> to vector<32x128xf32>
    %cst_82 = arith.constant dense<0.000000e+00> : vector<8x128xf32>
    %205 = tpu.matmul %202, %204, %cst_82 {dimension_numbers = #tpu.dot_dimension_numbers<[1], [0], [0], [1], [0, 0, 1, 1], [], []>} : vector<8x32xf32>, vector<32x128xf32>, vector<8x128xf32> -> vector<8x128xf32>
    %c0_83 = arith.constant 0 : index
    %c0_84 = arith.constant 0 : index
    %c0_85 = arith.constant 0 : index
    %206 = vector.load %arg4[%c0_83, %c0_84, %c0_85] : memref<1x1x128xf32, #tpu.memory_space<vmem>>, vector<1x1x128xf32>
    %207 = vector.shape_cast %206 : vector<1x1x128xf32> to vector<1x128xf32>
    %208 = vector.broadcast %207 : vector<1x128xf32> to vector<8x128xf32>
    %209 = arith.addf %205, %208 : vector<8x128xf32>
    %c1_86 = arith.constant 1 : index
    %c0_87 = arith.constant 0 : index
    %c0_88 = arith.constant 0 : index
    %210 = vector.load %arg5[%c1_86, %c0_87, %c0_88] : memref<2x32x128xf32, #tpu.memory_space<vmem>>, vector<1x32x128xf32>
    %211 = vector.shape_cast %210 : vector<1x32x128xf32> to vector<32x128xf32>
    %cst_89 = arith.constant dense<0.000000e+00> : vector<8x128xf32>
    %212 = tpu.matmul %162, %211, %cst_89 {dimension_numbers = #tpu.dot_dimension_numbers<[1], [0], [0], [1], [0, 0, 1, 1], [], []>} : vector<8x32xf32>, vector<32x128xf32>, vector<8x128xf32> -> vector<8x128xf32>
    %c1_90 = arith.constant 1 : index
    %c0_91 = arith.constant 0 : index
    %c0_92 = arith.constant 0 : index
    %213 = vector.load %arg6[%c1_90, %c0_91, %c0_92] : memref<2x1x128xf32, #tpu.memory_space<vmem>>, vector<1x1x128xf32>
    %214 = vector.shape_cast %213 : vector<1x1x128xf32> to vector<1x128xf32>
    %215 = vector.broadcast %214 : vector<1x128xf32> to vector<8x128xf32>
    %216 = arith.addf %212, %215 : vector<8x128xf32>
    %217 = vector.extract_strided_slice %209 {offsets = [0, 0], sizes = [8, 32], strides = [1, 1]} : vector<8x128xf32> to vector<8x32xf32>
    %218 = vector.extract_strided_slice %216 {offsets = [0, 0], sizes = [8, 32], strides = [1, 1]} : vector<8x128xf32> to vector<8x32xf32>
    %219 = arith.addf %217, %218 : vector<8x32xf32>
    %220 = arith.negf %219 : vector<8x32xf32>
    %221 = math.exp %220 : vector<8x32xf32>
    %cst_93 = arith.constant 1.000000e+00 : f32
    %222 = vector.broadcast %cst_93 : f32 to vector<8x32xf32>
    %223 = arith.addf %222, %221 : vector<8x32xf32>
    %224 = arith.divf %222, %223 : vector<8x32xf32>
    %225 = vector.extract_strided_slice %209 {offsets = [0, 32], sizes = [8, 32], strides = [1, 1]} : vector<8x128xf32> to vector<8x32xf32>
    %226 = vector.extract_strided_slice %216 {offsets = [0, 32], sizes = [8, 32], strides = [1, 1]} : vector<8x128xf32> to vector<8x32xf32>
    %227 = arith.addf %225, %226 : vector<8x32xf32>
    %228 = arith.negf %227 : vector<8x32xf32>
    %229 = math.exp %228 : vector<8x32xf32>
    %cst_94 = arith.constant 1.000000e+00 : f32
    %230 = vector.broadcast %cst_94 : f32 to vector<8x32xf32>
    %231 = arith.addf %230, %229 : vector<8x32xf32>
    %232 = arith.divf %230, %231 : vector<8x32xf32>
    %233 = vector.extract_strided_slice %209 {offsets = [0, 64], sizes = [8, 32], strides = [1, 1]} : vector<8x128xf32> to vector<8x32xf32>
    %234 = vector.extract_strided_slice %216 {offsets = [0, 64], sizes = [8, 32], strides = [1, 1]} : vector<8x128xf32> to vector<8x32xf32>
    %235 = arith.mulf %224, %234 : vector<8x32xf32>
    %236 = arith.addf %233, %235 : vector<8x32xf32>
    %237 = math.tanh %236 : vector<8x32xf32>
    %cst_95 = arith.constant 1.000000e+00 : f32
    %238 = vector.broadcast %cst_95 : f32 to vector<8x32xf32>
    %239 = arith.subf %238, %232 : vector<8x32xf32>
    %240 = arith.mulf %239, %237 : vector<8x32xf32>
    %241 = arith.mulf %232, %162 : vector<8x32xf32>
    %242 = arith.addf %240, %241 : vector<8x32xf32>
    %243 = arith.index_cast %c2_i32 : i32 to index
    %c0_96 = arith.constant 0 : index
    %c0_97 = arith.constant 0 : index
    %244 = vector.load %arg7[%243, %c0_96, %c0_97] : memref<8x8x32xf32, #tpu.memory_space<vmem>>, vector<1x8x32xf32>
    %245 = vector.shape_cast %244 : vector<1x8x32xf32> to vector<8x32xf32>
    %246 = vector.shape_cast %242 : vector<8x32xf32> to vector<1x8x32xf32>
    tpu.vector_store %arg7[%243, %c0_96, %c0_97], %246 {strides = array<i32>} : memref<8x8x32xf32, #tpu.memory_space<vmem>>, vector<1x8x32xf32>,
    %c3_i32 = arith.constant 3 : i32
    %247 = arith.index_cast %c3_i32 : i32 to index
    %c0_98 = arith.constant 0 : index
    %c0_99 = arith.constant 0 : index
    %248 = vector.load %arg2[%247, %c0_98, %c0_99] : memref<8x8x128xf32, #tpu.memory_space<vmem>>, vector<1x8x128xf32>
    %249 = vector.shape_cast %248 : vector<1x8x128xf32> to vector<8x128xf32>
    %c0_100 = arith.constant 0 : index
    %c0_101 = arith.constant 0 : index
    %c0_102 = arith.constant 0 : index
    %250 = vector.load %arg5[%c0_100, %c0_101, %c0_102] : memref<2x32x128xf32, #tpu.memory_space<vmem>>, vector<1x32x128xf32>
    %251 = vector.shape_cast %250 : vector<1x32x128xf32> to vector<32x128xf32>
    %cst_103 = arith.constant dense<0.000000e+00> : vector<8x128xf32>
    %252 = tpu.matmul %202, %251, %cst_103 {dimension_numbers = #tpu.dot_dimension_numbers<[1], [0], [0], [1], [0, 0, 1, 1], [], []>} : vector<8x32xf32>, vector<32x128xf32>, vector<8x128xf32> -> vector<8x128xf32>
    %c0_104 = arith.constant 0 : index
    %c0_105 = arith.constant 0 : index
    %c0_106 = arith.constant 0 : index
    %253 = vector.load %arg6[%c0_104, %c0_105, %c0_106] : memref<2x1x128xf32, #tpu.memory_space<vmem>>, vector<1x1x128xf32>
    %254 = vector.shape_cast %253 : vector<1x1x128xf32> to vector<1x128xf32>
    %255 = vector.broadcast %254 : vector<1x128xf32> to vector<8x128xf32>
    %256 = arith.addf %252, %255 : vector<8x128xf32>
    %257 = vector.extract_strided_slice %249 {offsets = [0, 0], sizes = [8, 32], strides = [1, 1]} : vector<8x128xf32> to vector<8x32xf32>
    %258 = vector.extract_strided_slice %256 {offsets = [0, 0], sizes = [8, 32], strides = [1, 1]} : vector<8x128xf32> to vector<8x32xf32>
    %259 = arith.addf %257, %258 : vector<8x32xf32>
    %260 = arith.negf %259 : vector<8x32xf32>
    %261 = math.exp %260 : vector<8x32xf32>
    %cst_107 = arith.constant 1.000000e+00 : f32
    %262 = vector.broadcast %cst_107 : f32 to vector<8x32xf32>
    %263 = arith.addf %262, %261 : vector<8x32xf32>
    %264 = arith.divf %262, %263 : vector<8x32xf32>
    %265 = vector.extract_strided_slice %249 {offsets = [0, 32], sizes = [8, 32], strides = [1, 1]} : vector<8x128xf32> to vector<8x32xf32>
    %266 = vector.extract_strided_slice %256 {offsets = [0, 32], sizes = [8, 32], strides = [1, 1]} : vector<8x128xf32> to vector<8x32xf32>
    %267 = arith.addf %265, %266 : vector<8x32xf32>
    %268 = arith.negf %267 : vector<8x32xf32>
    %269 = math.exp %268 : vector<8x32xf32>
    %cst_108 = arith.constant 1.000000e+00 : f32
    %270 = vector.broadcast %cst_108 : f32 to vector<8x32xf32>
    %271 = arith.addf %270, %269 : vector<8x32xf32>
    %272 = arith.divf %270, %271 : vector<8x32xf32>
    %273 = vector.extract_strided_slice %249 {offsets = [0, 64], sizes = [8, 32], strides = [1, 1]} : vector<8x128xf32> to vector<8x32xf32>
    %274 = vector.extract_strided_slice %256 {offsets = [0, 64], sizes = [8, 32], strides = [1, 1]} : vector<8x128xf32> to vector<8x32xf32>
    %275 = arith.mulf %264, %274 : vector<8x32xf32>
    %276 = arith.addf %273, %275 : vector<8x32xf32>
    %277 = math.tanh %276 : vector<8x32xf32>
    %cst_109 = arith.constant 1.000000e+00 : f32
    %278 = vector.broadcast %cst_109 : f32 to vector<8x32xf32>
    %279 = arith.subf %278, %272 : vector<8x32xf32>
    %280 = arith.mulf %279, %277 : vector<8x32xf32>
    %281 = arith.mulf %272, %202 : vector<8x32xf32>
    %282 = arith.addf %280, %281 : vector<8x32xf32>
    %c0_110 = arith.constant 0 : index
    %c0_111 = arith.constant 0 : index
    %c0_112 = arith.constant 0 : index
    %283 = vector.load %arg3[%c0_110, %c0_111, %c0_112] : memref<1x32x128xf32, #tpu.memory_space<vmem>>, vector<1x32x128xf32>
    %284 = vector.shape_cast %283 : vector<1x32x128xf32> to vector<32x128xf32>
    %cst_113 = arith.constant dense<0.000000e+00> : vector<8x128xf32>
    %285 = tpu.matmul %282, %284, %cst_113 {dimension_numbers = #tpu.dot_dimension_numbers<[1], [0], [0], [1], [0, 0, 1, 1], [], []>} : vector<8x32xf32>, vector<32x128xf32>, vector<8x128xf32> -> vector<8x128xf32>
    %c0_114 = arith.constant 0 : index
    %c0_115 = arith.constant 0 : index
    %c0_116 = arith.constant 0 : index
    %286 = vector.load %arg4[%c0_114, %c0_115, %c0_116] : memref<1x1x128xf32, #tpu.memory_space<vmem>>, vector<1x1x128xf32>
    %287 = vector.shape_cast %286 : vector<1x1x128xf32> to vector<1x128xf32>
    %288 = vector.broadcast %287 : vector<1x128xf32> to vector<8x128xf32>
    %289 = arith.addf %285, %288 : vector<8x128xf32>
    %c1_117 = arith.constant 1 : index
    %c0_118 = arith.constant 0 : index
    %c0_119 = arith.constant 0 : index
    %290 = vector.load %arg5[%c1_117, %c0_118, %c0_119] : memref<2x32x128xf32, #tpu.memory_space<vmem>>, vector<1x32x128xf32>
    %291 = vector.shape_cast %290 : vector<1x32x128xf32> to vector<32x128xf32>
    %cst_120 = arith.constant dense<0.000000e+00> : vector<8x128xf32>
    %292 = tpu.matmul %242, %291, %cst_120 {dimension_numbers = #tpu.dot_dimension_numbers<[1], [0], [0], [1], [0, 0, 1, 1], [], []>} : vector<8x32xf32>, vector<32x128xf32>, vector<8x128xf32> -> vector<8x128xf32>
    %c1_121 = arith.constant 1 : index
    %c0_122 = arith.constant 0 : index
    %c0_123 = arith.constant 0 : index
    %293 = vector.load %arg6[%c1_121, %c0_122, %c0_123] : memref<2x1x128xf32, #tpu.memory_space<vmem>>, vector<1x1x128xf32>
    %294 = vector.shape_cast %293 : vector<1x1x128xf32> to vector<1x128xf32>
    %295 = vector.broadcast %294 : vector<1x128xf32> to vector<8x128xf32>
    %296 = arith.addf %292, %295 : vector<8x128xf32>
    %297 = vector.extract_strided_slice %289 {offsets = [0, 0], sizes = [8, 32], strides = [1, 1]} : vector<8x128xf32> to vector<8x32xf32>
    %298 = vector.extract_strided_slice %296 {offsets = [0, 0], sizes = [8, 32], strides = [1, 1]} : vector<8x128xf32> to vector<8x32xf32>
    %299 = arith.addf %297, %298 : vector<8x32xf32>
    %300 = arith.negf %299 : vector<8x32xf32>
    %301 = math.exp %300 : vector<8x32xf32>
    %cst_124 = arith.constant 1.000000e+00 : f32
    %302 = vector.broadcast %cst_124 : f32 to vector<8x32xf32>
    %303 = arith.addf %302, %301 : vector<8x32xf32>
    %304 = arith.divf %302, %303 : vector<8x32xf32>
    %305 = vector.extract_strided_slice %289 {offsets = [0, 32], sizes = [8, 32], strides = [1, 1]} : vector<8x128xf32> to vector<8x32xf32>
    %306 = vector.extract_strided_slice %296 {offsets = [0, 32], sizes = [8, 32], strides = [1, 1]} : vector<8x128xf32> to vector<8x32xf32>
    %307 = arith.addf %305, %306 : vector<8x32xf32>
    %308 = arith.negf %307 : vector<8x32xf32>
    %309 = math.exp %308 : vector<8x32xf32>
    %cst_125 = arith.constant 1.000000e+00 : f32
    %310 = vector.broadcast %cst_125 : f32 to vector<8x32xf32>
    %311 = arith.addf %310, %309 : vector<8x32xf32>
    %312 = arith.divf %310, %311 : vector<8x32xf32>
    %313 = vector.extract_strided_slice %289 {offsets = [0, 64], sizes = [8, 32], strides = [1, 1]} : vector<8x128xf32> to vector<8x32xf32>
    %314 = vector.extract_strided_slice %296 {offsets = [0, 64], sizes = [8, 32], strides = [1, 1]} : vector<8x128xf32> to vector<8x32xf32>
    %315 = arith.mulf %304, %314 : vector<8x32xf32>
    %316 = arith.addf %313, %315 : vector<8x32xf32>
    %317 = math.tanh %316 : vector<8x32xf32>
    %cst_126 = arith.constant 1.000000e+00 : f32
    %318 = vector.broadcast %cst_126 : f32 to vector<8x32xf32>
    %319 = arith.subf %318, %312 : vector<8x32xf32>
    %320 = arith.mulf %319, %317 : vector<8x32xf32>
    %321 = arith.mulf %312, %242 : vector<8x32xf32>
    %322 = arith.addf %320, %321 : vector<8x32xf32>
    %323 = arith.index_cast %c3_i32 : i32 to index
    %c0_127 = arith.constant 0 : index
    %c0_128 = arith.constant 0 : index
    %324 = vector.load %arg7[%323, %c0_127, %c0_128] : memref<8x8x32xf32, #tpu.memory_space<vmem>>, vector<1x8x32xf32>
    %325 = vector.shape_cast %324 : vector<1x8x32xf32> to vector<8x32xf32>
    %326 = vector.shape_cast %322 : vector<8x32xf32> to vector<1x8x32xf32>
    tpu.vector_store %arg7[%323, %c0_127, %c0_128], %326 {strides = array<i32>} : memref<8x8x32xf32, #tpu.memory_space<vmem>>, vector<1x8x32xf32>,
    %c4_i32 = arith.constant 4 : i32
    %327 = arith.index_cast %c4_i32 : i32 to index
    %c0_129 = arith.constant 0 : index
    %c0_130 = arith.constant 0 : index
    %328 = vector.load %arg2[%327, %c0_129, %c0_130] : memref<8x8x128xf32, #tpu.memory_space<vmem>>, vector<1x8x128xf32>
    %329 = vector.shape_cast %328 : vector<1x8x128xf32> to vector<8x128xf32>
    %c0_131 = arith.constant 0 : index
    %c0_132 = arith.constant 0 : index
    %c0_133 = arith.constant 0 : index
    %330 = vector.load %arg5[%c0_131, %c0_132, %c0_133] : memref<2x32x128xf32, #tpu.memory_space<vmem>>, vector<1x32x128xf32>
    %331 = vector.shape_cast %330 : vector<1x32x128xf32> to vector<32x128xf32>
    %cst_134 = arith.constant dense<0.000000e+00> : vector<8x128xf32>
    %332 = tpu.matmul %282, %331, %cst_134 {dimension_numbers = #tpu.dot_dimension_numbers<[1], [0], [0], [1], [0, 0, 1, 1], [], []>} : vector<8x32xf32>, vector<32x128xf32>, vector<8x128xf32> -> vector<8x128xf32>
    %c0_135 = arith.constant 0 : index
    %c0_136 = arith.constant 0 : index
    %c0_137 = arith.constant 0 : index
    %333 = vector.load %arg6[%c0_135, %c0_136, %c0_137] : memref<2x1x128xf32, #tpu.memory_space<vmem>>, vector<1x1x128xf32>
    %334 = vector.shape_cast %333 : vector<1x1x128xf32> to vector<1x128xf32>
    %335 = vector.broadcast %334 : vector<1x128xf32> to vector<8x128xf32>
    %336 = arith.addf %332, %335 : vector<8x128xf32>
    %337 = vector.extract_strided_slice %329 {offsets = [0, 0], sizes = [8, 32], strides = [1, 1]} : vector<8x128xf32> to vector<8x32xf32>
    %338 = vector.extract_strided_slice %336 {offsets = [0, 0], sizes = [8, 32], strides = [1, 1]} : vector<8x128xf32> to vector<8x32xf32>
    %339 = arith.addf %337, %338 : vector<8x32xf32>
    %340 = arith.negf %339 : vector<8x32xf32>
    %341 = math.exp %340 : vector<8x32xf32>
    %cst_138 = arith.constant 1.000000e+00 : f32
    %342 = vector.broadcast %cst_138 : f32 to vector<8x32xf32>
    %343 = arith.addf %342, %341 : vector<8x32xf32>
    %344 = arith.divf %342, %343 : vector<8x32xf32>
    %345 = vector.extract_strided_slice %329 {offsets = [0, 32], sizes = [8, 32], strides = [1, 1]} : vector<8x128xf32> to vector<8x32xf32>
    %346 = vector.extract_strided_slice %336 {offsets = [0, 32], sizes = [8, 32], strides = [1, 1]} : vector<8x128xf32> to vector<8x32xf32>
    %347 = arith.addf %345, %346 : vector<8x32xf32>
    %348 = arith.negf %347 : vector<8x32xf32>
    %349 = math.exp %348 : vector<8x32xf32>
    %cst_139 = arith.constant 1.000000e+00 : f32
    %350 = vector.broadcast %cst_139 : f32 to vector<8x32xf32>
    %351 = arith.addf %350, %349 : vector<8x32xf32>
    %352 = arith.divf %350, %351 : vector<8x32xf32>
    %353 = vector.extract_strided_slice %329 {offsets = [0, 64], sizes = [8, 32], strides = [1, 1]} : vector<8x128xf32> to vector<8x32xf32>
    %354 = vector.extract_strided_slice %336 {offsets = [0, 64], sizes = [8, 32], strides = [1, 1]} : vector<8x128xf32> to vector<8x32xf32>
    %355 = arith.mulf %344, %354 : vector<8x32xf32>
    %356 = arith.addf %353, %355 : vector<8x32xf32>
    %357 = math.tanh %356 : vector<8x32xf32>
    %cst_140 = arith.constant 1.000000e+00 : f32
    %358 = vector.broadcast %cst_140 : f32 to vector<8x32xf32>
    %359 = arith.subf %358, %352 : vector<8x32xf32>
    %360 = arith.mulf %359, %357 : vector<8x32xf32>
    %361 = arith.mulf %352, %282 : vector<8x32xf32>
    %362 = arith.addf %360, %361 : vector<8x32xf32>
    %c0_141 = arith.constant 0 : index
    %c0_142 = arith.constant 0 : index
    %c0_143 = arith.constant 0 : index
    %363 = vector.load %arg3[%c0_141, %c0_142, %c0_143] : memref<1x32x128xf32, #tpu.memory_space<vmem>>, vector<1x32x128xf32>
    %364 = vector.shape_cast %363 : vector<1x32x128xf32> to vector<32x128xf32>
    %cst_144 = arith.constant dense<0.000000e+00> : vector<8x128xf32>
    %365 = tpu.matmul %362, %364, %cst_144 {dimension_numbers = #tpu.dot_dimension_numbers<[1], [0], [0], [1], [0, 0, 1, 1], [], []>} : vector<8x32xf32>, vector<32x128xf32>, vector<8x128xf32> -> vector<8x128xf32>
    %c0_145 = arith.constant 0 : index
    %c0_146 = arith.constant 0 : index
    %c0_147 = arith.constant 0 : index
    %366 = vector.load %arg4[%c0_145, %c0_146, %c0_147] : memref<1x1x128xf32, #tpu.memory_space<vmem>>, vector<1x1x128xf32>
    %367 = vector.shape_cast %366 : vector<1x1x128xf32> to vector<1x128xf32>
    %368 = vector.broadcast %367 : vector<1x128xf32> to vector<8x128xf32>
    %369 = arith.addf %365, %368 : vector<8x128xf32>
    %c1_148 = arith.constant 1 : index
    %c0_149 = arith.constant 0 : index
    %c0_150 = arith.constant 0 : index
    %370 = vector.load %arg5[%c1_148, %c0_149, %c0_150] : memref<2x32x128xf32, #tpu.memory_space<vmem>>, vector<1x32x128xf32>
    %371 = vector.shape_cast %370 : vector<1x32x128xf32> to vector<32x128xf32>
    %cst_151 = arith.constant dense<0.000000e+00> : vector<8x128xf32>
    %372 = tpu.matmul %322, %371, %cst_151 {dimension_numbers = #tpu.dot_dimension_numbers<[1], [0], [0], [1], [0, 0, 1, 1], [], []>} : vector<8x32xf32>, vector<32x128xf32>, vector<8x128xf32> -> vector<8x128xf32>
    %c1_152 = arith.constant 1 : index
    %c0_153 = arith.constant 0 : index
    %c0_154 = arith.constant 0 : index
    %373 = vector.load %arg6[%c1_152, %c0_153, %c0_154] : memref<2x1x128xf32, #tpu.memory_space<vmem>>, vector<1x1x128xf32>
    %374 = vector.shape_cast %373 : vector<1x1x128xf32> to vector<1x128xf32>
    %375 = vector.broadcast %374 : vector<1x128xf32> to vector<8x128xf32>
    %376 = arith.addf %372, %375 : vector<8x128xf32>
    %377 = vector.extract_strided_slice %369 {offsets = [0, 0], sizes = [8, 32], strides = [1, 1]} : vector<8x128xf32> to vector<8x32xf32>
    %378 = vector.extract_strided_slice %376 {offsets = [0, 0], sizes = [8, 32], strides = [1, 1]} : vector<8x128xf32> to vector<8x32xf32>
    %379 = arith.addf %377, %378 : vector<8x32xf32>
    %380 = arith.negf %379 : vector<8x32xf32>
    %381 = math.exp %380 : vector<8x32xf32>
    %cst_155 = arith.constant 1.000000e+00 : f32
    %382 = vector.broadcast %cst_155 : f32 to vector<8x32xf32>
    %383 = arith.addf %382, %381 : vector<8x32xf32>
    %384 = arith.divf %382, %383 : vector<8x32xf32>
    %385 = vector.extract_strided_slice %369 {offsets = [0, 32], sizes = [8, 32], strides = [1, 1]} : vector<8x128xf32> to vector<8x32xf32>
    %386 = vector.extract_strided_slice %376 {offsets = [0, 32], sizes = [8, 32], strides = [1, 1]} : vector<8x128xf32> to vector<8x32xf32>
    %387 = arith.addf %385, %386 : vector<8x32xf32>
    %388 = arith.negf %387 : vector<8x32xf32>
    %389 = math.exp %388 : vector<8x32xf32>
    %cst_156 = arith.constant 1.000000e+00 : f32
    %390 = vector.broadcast %cst_156 : f32 to vector<8x32xf32>
    %391 = arith.addf %390, %389 : vector<8x32xf32>
    %392 = arith.divf %390, %391 : vector<8x32xf32>
    %393 = vector.extract_strided_slice %369 {offsets = [0, 64], sizes = [8, 32], strides = [1, 1]} : vector<8x128xf32> to vector<8x32xf32>
    %394 = vector.extract_strided_slice %376 {offsets = [0, 64], sizes = [8, 32], strides = [1, 1]} : vector<8x128xf32> to vector<8x32xf32>
    %395 = arith.mulf %384, %394 : vector<8x32xf32>
    %396 = arith.addf %393, %395 : vector<8x32xf32>
    %397 = math.tanh %396 : vector<8x32xf32>
    %cst_157 = arith.constant 1.000000e+00 : f32
    %398 = vector.broadcast %cst_157 : f32 to vector<8x32xf32>
    %399 = arith.subf %398, %392 : vector<8x32xf32>
    %400 = arith.mulf %399, %397 : vector<8x32xf32>
    %401 = arith.mulf %392, %322 : vector<8x32xf32>
    %402 = arith.addf %400, %401 : vector<8x32xf32>
    %403 = arith.index_cast %c4_i32 : i32 to index
    %c0_158 = arith.constant 0 : index
    %c0_159 = arith.constant 0 : index
    %404 = vector.load %arg7[%403, %c0_158, %c0_159] : memref<8x8x32xf32, #tpu.memory_space<vmem>>, vector<1x8x32xf32>
    %405 = vector.shape_cast %404 : vector<1x8x32xf32> to vector<8x32xf32>
    %406 = vector.shape_cast %402 : vector<8x32xf32> to vector<1x8x32xf32>
    tpu.vector_store %arg7[%403, %c0_158, %c0_159], %406 {strides = array<i32>} : memref<8x8x32xf32, #tpu.memory_space<vmem>>, vector<1x8x32xf32>,
    %c5_i32 = arith.constant 5 : i32
    %407 = arith.index_cast %c5_i32 : i32 to index
    %c0_160 = arith.constant 0 : index
    %c0_161 = arith.constant 0 : index
    %408 = vector.load %arg2[%407, %c0_160, %c0_161] : memref<8x8x128xf32, #tpu.memory_space<vmem>>, vector<1x8x128xf32>
    %409 = vector.shape_cast %408 : vector<1x8x128xf32> to vector<8x128xf32>
    %c0_162 = arith.constant 0 : index
    %c0_163 = arith.constant 0 : index
    %c0_164 = arith.constant 0 : index
    %410 = vector.load %arg5[%c0_162, %c0_163, %c0_164] : memref<2x32x128xf32, #tpu.memory_space<vmem>>, vector<1x32x128xf32>
    %411 = vector.shape_cast %410 : vector<1x32x128xf32> to vector<32x128xf32>
    %cst_165 = arith.constant dense<0.000000e+00> : vector<8x128xf32>
    %412 = tpu.matmul %362, %411, %cst_165 {dimension_numbers = #tpu.dot_dimension_numbers<[1], [0], [0], [1], [0, 0, 1, 1], [], []>} : vector<8x32xf32>, vector<32x128xf32>, vector<8x128xf32> -> vector<8x128xf32>
    %c0_166 = arith.constant 0 : index
    %c0_167 = arith.constant 0 : index
    %c0_168 = arith.constant 0 : index
    %413 = vector.load %arg6[%c0_166, %c0_167, %c0_168] : memref<2x1x128xf32, #tpu.memory_space<vmem>>, vector<1x1x128xf32>
    %414 = vector.shape_cast %413 : vector<1x1x128xf32> to vector<1x128xf32>
    %415 = vector.broadcast %414 : vector<1x128xf32> to vector<8x128xf32>
    %416 = arith.addf %412, %415 : vector<8x128xf32>
    %417 = vector.extract_strided_slice %409 {offsets = [0, 0], sizes = [8, 32], strides = [1, 1]} : vector<8x128xf32> to vector<8x32xf32>
    %418 = vector.extract_strided_slice %416 {offsets = [0, 0], sizes = [8, 32], strides = [1, 1]} : vector<8x128xf32> to vector<8x32xf32>
    %419 = arith.addf %417, %418 : vector<8x32xf32>
    %420 = arith.negf %419 : vector<8x32xf32>
    %421 = math.exp %420 : vector<8x32xf32>
    %cst_169 = arith.constant 1.000000e+00 : f32
    %422 = vector.broadcast %cst_169 : f32 to vector<8x32xf32>
    %423 = arith.addf %422, %421 : vector<8x32xf32>
    %424 = arith.divf %422, %423 : vector<8x32xf32>
    %425 = vector.extract_strided_slice %409 {offsets = [0, 32], sizes = [8, 32], strides = [1, 1]} : vector<8x128xf32> to vector<8x32xf32>
    %426 = vector.extract_strided_slice %416 {offsets = [0, 32], sizes = [8, 32], strides = [1, 1]} : vector<8x128xf32> to vector<8x32xf32>
    %427 = arith.addf %425, %426 : vector<8x32xf32>
    %428 = arith.negf %427 : vector<8x32xf32>
    %429 = math.exp %428 : vector<8x32xf32>
    %cst_170 = arith.constant 1.000000e+00 : f32
    %430 = vector.broadcast %cst_170 : f32 to vector<8x32xf32>
    %431 = arith.addf %430, %429 : vector<8x32xf32>
    %432 = arith.divf %430, %431 : vector<8x32xf32>
    %433 = vector.extract_strided_slice %409 {offsets = [0, 64], sizes = [8, 32], strides = [1, 1]} : vector<8x128xf32> to vector<8x32xf32>
    %434 = vector.extract_strided_slice %416 {offsets = [0, 64], sizes = [8, 32], strides = [1, 1]} : vector<8x128xf32> to vector<8x32xf32>
    %435 = arith.mulf %424, %434 : vector<8x32xf32>
    %436 = arith.addf %433, %435 : vector<8x32xf32>
    %437 = math.tanh %436 : vector<8x32xf32>
    %cst_171 = arith.constant 1.000000e+00 : f32
    %438 = vector.broadcast %cst_171 : f32 to vector<8x32xf32>
    %439 = arith.subf %438, %432 : vector<8x32xf32>
    %440 = arith.mulf %439, %437 : vector<8x32xf32>
    %441 = arith.mulf %432, %362 : vector<8x32xf32>
    %442 = arith.addf %440, %441 : vector<8x32xf32>
    %c0_172 = arith.constant 0 : index
    %c0_173 = arith.constant 0 : index
    %c0_174 = arith.constant 0 : index
    %443 = vector.load %arg3[%c0_172, %c0_173, %c0_174] : memref<1x32x128xf32, #tpu.memory_space<vmem>>, vector<1x32x128xf32>
    %444 = vector.shape_cast %443 : vector<1x32x128xf32> to vector<32x128xf32>
    %cst_175 = arith.constant dense<0.000000e+00> : vector<8x128xf32>
    %445 = tpu.matmul %442, %444, %cst_175 {dimension_numbers = #tpu.dot_dimension_numbers<[1], [0], [0], [1], [0, 0, 1, 1], [], []>} : vector<8x32xf32>, vector<32x128xf32>, vector<8x128xf32> -> vector<8x128xf32>
    %c0_176 = arith.constant 0 : index
    %c0_177 = arith.constant 0 : index
    %c0_178 = arith.constant 0 : index
    %446 = vector.load %arg4[%c0_176, %c0_177, %c0_178] : memref<1x1x128xf32, #tpu.memory_space<vmem>>, vector<1x1x128xf32>
    %447 = vector.shape_cast %446 : vector<1x1x128xf32> to vector<1x128xf32>
    %448 = vector.broadcast %447 : vector<1x128xf32> to vector<8x128xf32>
    %449 = arith.addf %445, %448 : vector<8x128xf32>
    %c1_179 = arith.constant 1 : index
    %c0_180 = arith.constant 0 : index
    %c0_181 = arith.constant 0 : index
    %450 = vector.load %arg5[%c1_179, %c0_180, %c0_181] : memref<2x32x128xf32, #tpu.memory_space<vmem>>, vector<1x32x128xf32>
    %451 = vector.shape_cast %450 : vector<1x32x128xf32> to vector<32x128xf32>
    %cst_182 = arith.constant dense<0.000000e+00> : vector<8x128xf32>
    %452 = tpu.matmul %402, %451, %cst_182 {dimension_numbers = #tpu.dot_dimension_numbers<[1], [0], [0], [1], [0, 0, 1, 1], [], []>} : vector<8x32xf32>, vector<32x128xf32>, vector<8x128xf32> -> vector<8x128xf32>
    %c1_183 = arith.constant 1 : index
    %c0_184 = arith.constant 0 : index
    %c0_185 = arith.constant 0 : index
    %453 = vector.load %arg6[%c1_183, %c0_184, %c0_185] : memref<2x1x128xf32, #tpu.memory_space<vmem>>, vector<1x1x128xf32>
    %454 = vector.shape_cast %453 : vector<1x1x128xf32> to vector<1x128xf32>
    %455 = vector.broadcast %454 : vector<1x128xf32> to vector<8x128xf32>
    %456 = arith.addf %452, %455 : vector<8x128xf32>
    %457 = vector.extract_strided_slice %449 {offsets = [0, 0], sizes = [8, 32], strides = [1, 1]} : vector<8x128xf32> to vector<8x32xf32>
    %458 = vector.extract_strided_slice %456 {offsets = [0, 0], sizes = [8, 32], strides = [1, 1]} : vector<8x128xf32> to vector<8x32xf32>
    %459 = arith.addf %457, %458 : vector<8x32xf32>
    %460 = arith.negf %459 : vector<8x32xf32>
    %461 = math.exp %460 : vector<8x32xf32>
    %cst_186 = arith.constant 1.000000e+00 : f32
    %462 = vector.broadcast %cst_186 : f32 to vector<8x32xf32>
    %463 = arith.addf %462, %461 : vector<8x32xf32>
    %464 = arith.divf %462, %463 : vector<8x32xf32>
    %465 = vector.extract_strided_slice %449 {offsets = [0, 32], sizes = [8, 32], strides = [1, 1]} : vector<8x128xf32> to vector<8x32xf32>
    %466 = vector.extract_strided_slice %456 {offsets = [0, 32], sizes = [8, 32], strides = [1, 1]} : vector<8x128xf32> to vector<8x32xf32>
    %467 = arith.addf %465, %466 : vector<8x32xf32>
    %468 = arith.negf %467 : vector<8x32xf32>
    %469 = math.exp %468 : vector<8x32xf32>
    %cst_187 = arith.constant 1.000000e+00 : f32
    %470 = vector.broadcast %cst_187 : f32 to vector<8x32xf32>
    %471 = arith.addf %470, %469 : vector<8x32xf32>
    %472 = arith.divf %470, %471 : vector<8x32xf32>
    %473 = vector.extract_strided_slice %449 {offsets = [0, 64], sizes = [8, 32], strides = [1, 1]} : vector<8x128xf32> to vector<8x32xf32>
    %474 = vector.extract_strided_slice %456 {offsets = [0, 64], sizes = [8, 32], strides = [1, 1]} : vector<8x128xf32> to vector<8x32xf32>
    %475 = arith.mulf %464, %474 : vector<8x32xf32>
    %476 = arith.addf %473, %475 : vector<8x32xf32>
    %477 = math.tanh %476 : vector<8x32xf32>
    %cst_188 = arith.constant 1.000000e+00 : f32
    %478 = vector.broadcast %cst_188 : f32 to vector<8x32xf32>
    %479 = arith.subf %478, %472 : vector<8x32xf32>
    %480 = arith.mulf %479, %477 : vector<8x32xf32>
    %481 = arith.mulf %472, %402 : vector<8x32xf32>
    %482 = arith.addf %480, %481 : vector<8x32xf32>
    %483 = arith.index_cast %c5_i32 : i32 to index
    %c0_189 = arith.constant 0 : index
    %c0_190 = arith.constant 0 : index
    %484 = vector.load %arg7[%483, %c0_189, %c0_190] : memref<8x8x32xf32, #tpu.memory_space<vmem>>, vector<1x8x32xf32>
    %485 = vector.shape_cast %484 : vector<1x8x32xf32> to vector<8x32xf32>
    %486 = vector.shape_cast %482 : vector<8x32xf32> to vector<1x8x32xf32>
    tpu.vector_store %arg7[%483, %c0_189, %c0_190], %486 {strides = array<i32>} : memref<8x8x32xf32, #tpu.memory_space<vmem>>, vector<1x8x32xf32>,
    %c6_i32 = arith.constant 6 : i32
    %487 = arith.index_cast %c6_i32 : i32 to index
    %c0_191 = arith.constant 0 : index
    %c0_192 = arith.constant 0 : index
    %488 = vector.load %arg2[%487, %c0_191, %c0_192] : memref<8x8x128xf32, #tpu.memory_space<vmem>>, vector<1x8x128xf32>
    %489 = vector.shape_cast %488 : vector<1x8x128xf32> to vector<8x128xf32>
    %c0_193 = arith.constant 0 : index
    %c0_194 = arith.constant 0 : index
    %c0_195 = arith.constant 0 : index
    %490 = vector.load %arg5[%c0_193, %c0_194, %c0_195] : memref<2x32x128xf32, #tpu.memory_space<vmem>>, vector<1x32x128xf32>
    %491 = vector.shape_cast %490 : vector<1x32x128xf32> to vector<32x128xf32>
    %cst_196 = arith.constant dense<0.000000e+00> : vector<8x128xf32>
    %492 = tpu.matmul %442, %491, %cst_196 {dimension_numbers = #tpu.dot_dimension_numbers<[1], [0], [0], [1], [0, 0, 1, 1], [], []>} : vector<8x32xf32>, vector<32x128xf32>, vector<8x128xf32> -> vector<8x128xf32>
    %c0_197 = arith.constant 0 : index
    %c0_198 = arith.constant 0 : index
    %c0_199 = arith.constant 0 : index
    %493 = vector.load %arg6[%c0_197, %c0_198, %c0_199] : memref<2x1x128xf32, #tpu.memory_space<vmem>>, vector<1x1x128xf32>
    %494 = vector.shape_cast %493 : vector<1x1x128xf32> to vector<1x128xf32>
    %495 = vector.broadcast %494 : vector<1x128xf32> to vector<8x128xf32>
    %496 = arith.addf %492, %495 : vector<8x128xf32>
    %497 = vector.extract_strided_slice %489 {offsets = [0, 0], sizes = [8, 32], strides = [1, 1]} : vector<8x128xf32> to vector<8x32xf32>
    %498 = vector.extract_strided_slice %496 {offsets = [0, 0], sizes = [8, 32], strides = [1, 1]} : vector<8x128xf32> to vector<8x32xf32>
    %499 = arith.addf %497, %498 : vector<8x32xf32>
    %500 = arith.negf %499 : vector<8x32xf32>
    %501 = math.exp %500 : vector<8x32xf32>
    %cst_200 = arith.constant 1.000000e+00 : f32
    %502 = vector.broadcast %cst_200 : f32 to vector<8x32xf32>
    %503 = arith.addf %502, %501 : vector<8x32xf32>
    %504 = arith.divf %502, %503 : vector<8x32xf32>
    %505 = vector.extract_strided_slice %489 {offsets = [0, 32], sizes = [8, 32], strides = [1, 1]} : vector<8x128xf32> to vector<8x32xf32>
    %506 = vector.extract_strided_slice %496 {offsets = [0, 32], sizes = [8, 32], strides = [1, 1]} : vector<8x128xf32> to vector<8x32xf32>
    %507 = arith.addf %505, %506 : vector<8x32xf32>
    %508 = arith.negf %507 : vector<8x32xf32>
    %509 = math.exp %508 : vector<8x32xf32>
    %cst_201 = arith.constant 1.000000e+00 : f32
    %510 = vector.broadcast %cst_201 : f32 to vector<8x32xf32>
    %511 = arith.addf %510, %509 : vector<8x32xf32>
    %512 = arith.divf %510, %511 : vector<8x32xf32>
    %513 = vector.extract_strided_slice %489 {offsets = [0, 64], sizes = [8, 32], strides = [1, 1]} : vector<8x128xf32> to vector<8x32xf32>
    %514 = vector.extract_strided_slice %496 {offsets = [0, 64], sizes = [8, 32], strides = [1, 1]} : vector<8x128xf32> to vector<8x32xf32>
    %515 = arith.mulf %504, %514 : vector<8x32xf32>
    %516 = arith.addf %513, %515 : vector<8x32xf32>
    %517 = math.tanh %516 : vector<8x32xf32>
    %cst_202 = arith.constant 1.000000e+00 : f32
    %518 = vector.broadcast %cst_202 : f32 to vector<8x32xf32>
    %519 = arith.subf %518, %512 : vector<8x32xf32>
    %520 = arith.mulf %519, %517 : vector<8x32xf32>
    %521 = arith.mulf %512, %442 : vector<8x32xf32>
    %522 = arith.addf %520, %521 : vector<8x32xf32>
    %c0_203 = arith.constant 0 : index
    %c0_204 = arith.constant 0 : index
    %c0_205 = arith.constant 0 : index
    %523 = vector.load %arg3[%c0_203, %c0_204, %c0_205] : memref<1x32x128xf32, #tpu.memory_space<vmem>>, vector<1x32x128xf32>
    %524 = vector.shape_cast %523 : vector<1x32x128xf32> to vector<32x128xf32>
    %cst_206 = arith.constant dense<0.000000e+00> : vector<8x128xf32>
    %525 = tpu.matmul %522, %524, %cst_206 {dimension_numbers = #tpu.dot_dimension_numbers<[1], [0], [0], [1], [0, 0, 1, 1], [], []>} : vector<8x32xf32>, vector<32x128xf32>, vector<8x128xf32> -> vector<8x128xf32>
    %c0_207 = arith.constant 0 : index
    %c0_208 = arith.constant 0 : index
    %c0_209 = arith.constant 0 : index
    %526 = vector.load %arg4[%c0_207, %c0_208, %c0_209] : memref<1x1x128xf32, #tpu.memory_space<vmem>>, vector<1x1x128xf32>
    %527 = vector.shape_cast %526 : vector<1x1x128xf32> to vector<1x128xf32>
    %528 = vector.broadcast %527 : vector<1x128xf32> to vector<8x128xf32>
    %529 = arith.addf %525, %528 : vector<8x128xf32>
    %c1_210 = arith.constant 1 : index
    %c0_211 = arith.constant 0 : index
    %c0_212 = arith.constant 0 : index
    %530 = vector.load %arg5[%c1_210, %c0_211, %c0_212] : memref<2x32x128xf32, #tpu.memory_space<vmem>>, vector<1x32x128xf32>
    %531 = vector.shape_cast %530 : vector<1x32x128xf32> to vector<32x128xf32>
    %cst_213 = arith.constant dense<0.000000e+00> : vector<8x128xf32>
    %532 = tpu.matmul %482, %531, %cst_213 {dimension_numbers = #tpu.dot_dimension_numbers<[1], [0], [0], [1], [0, 0, 1, 1], [], []>} : vector<8x32xf32>, vector<32x128xf32>, vector<8x128xf32> -> vector<8x128xf32>
    %c1_214 = arith.constant 1 : index
    %c0_215 = arith.constant 0 : index
    %c0_216 = arith.constant 0 : index
    %533 = vector.load %arg6[%c1_214, %c0_215, %c0_216] : memref<2x1x128xf32, #tpu.memory_space<vmem>>, vector<1x1x128xf32>
    %534 = vector.shape_cast %533 : vector<1x1x128xf32> to vector<1x128xf32>
    %535 = vector.broadcast %534 : vector<1x128xf32> to vector<8x128xf32>
    %536 = arith.addf %532, %535 : vector<8x128xf32>
    %537 = vector.extract_strided_slice %529 {offsets = [0, 0], sizes = [8, 32], strides = [1, 1]} : vector<8x128xf32> to vector<8x32xf32>
    %538 = vector.extract_strided_slice %536 {offsets = [0, 0], sizes = [8, 32], strides = [1, 1]} : vector<8x128xf32> to vector<8x32xf32>
    %539 = arith.addf %537, %538 : vector<8x32xf32>
    %540 = arith.negf %539 : vector<8x32xf32>
    %541 = math.exp %540 : vector<8x32xf32>
    %cst_217 = arith.constant 1.000000e+00 : f32
    %542 = vector.broadcast %cst_217 : f32 to vector<8x32xf32>
    %543 = arith.addf %542, %541 : vector<8x32xf32>
    %544 = arith.divf %542, %543 : vector<8x32xf32>
    %545 = vector.extract_strided_slice %529 {offsets = [0, 32], sizes = [8, 32], strides = [1, 1]} : vector<8x128xf32> to vector<8x32xf32>
    %546 = vector.extract_strided_slice %536 {offsets = [0, 32], sizes = [8, 32], strides = [1, 1]} : vector<8x128xf32> to vector<8x32xf32>
    %547 = arith.addf %545, %546 : vector<8x32xf32>
    %548 = arith.negf %547 : vector<8x32xf32>
    %549 = math.exp %548 : vector<8x32xf32>
    %cst_218 = arith.constant 1.000000e+00 : f32
    %550 = vector.broadcast %cst_218 : f32 to vector<8x32xf32>
    %551 = arith.addf %550, %549 : vector<8x32xf32>
    %552 = arith.divf %550, %551 : vector<8x32xf32>
    %553 = vector.extract_strided_slice %529 {offsets = [0, 64], sizes = [8, 32], strides = [1, 1]} : vector<8x128xf32> to vector<8x32xf32>
    %554 = vector.extract_strided_slice %536 {offsets = [0, 64], sizes = [8, 32], strides = [1, 1]} : vector<8x128xf32> to vector<8x32xf32>
    %555 = arith.mulf %544, %554 : vector<8x32xf32>
    %556 = arith.addf %553, %555 : vector<8x32xf32>
    %557 = math.tanh %556 : vector<8x32xf32>
    %cst_219 = arith.constant 1.000000e+00 : f32
    %558 = vector.broadcast %cst_219 : f32 to vector<8x32xf32>
    %559 = arith.subf %558, %552 : vector<8x32xf32>
    %560 = arith.mulf %559, %557 : vector<8x32xf32>
    %561 = arith.mulf %552, %482 : vector<8x32xf32>
    %562 = arith.addf %560, %561 : vector<8x32xf32>
    %563 = arith.index_cast %c6_i32 : i32 to index
    %c0_220 = arith.constant 0 : index
    %c0_221 = arith.constant 0 : index
    %564 = vector.load %arg7[%563, %c0_220, %c0_221] : memref<8x8x32xf32, #tpu.memory_space<vmem>>, vector<1x8x32xf32>
    %565 = vector.shape_cast %564 : vector<1x8x32xf32> to vector<8x32xf32>
    %566 = vector.shape_cast %562 : vector<8x32xf32> to vector<1x8x32xf32>
    tpu.vector_store %arg7[%563, %c0_220, %c0_221], %566 {strides = array<i32>} : memref<8x8x32xf32, #tpu.memory_space<vmem>>, vector<1x8x32xf32>,
    %c7_i32 = arith.constant 7 : i32
    %567 = arith.index_cast %c7_i32 : i32 to index
    %c0_222 = arith.constant 0 : index
    %c0_223 = arith.constant 0 : index
    %568 = vector.load %arg2[%567, %c0_222, %c0_223] : memref<8x8x128xf32, #tpu.memory_space<vmem>>, vector<1x8x128xf32>
    %569 = vector.shape_cast %568 : vector<1x8x128xf32> to vector<8x128xf32>
    %c0_224 = arith.constant 0 : index
    %c0_225 = arith.constant 0 : index
    %c0_226 = arith.constant 0 : index
    %570 = vector.load %arg5[%c0_224, %c0_225, %c0_226] : memref<2x32x128xf32, #tpu.memory_space<vmem>>, vector<1x32x128xf32>
    %571 = vector.shape_cast %570 : vector<1x32x128xf32> to vector<32x128xf32>
    %cst_227 = arith.constant dense<0.000000e+00> : vector<8x128xf32>
    %572 = tpu.matmul %522, %571, %cst_227 {dimension_numbers = #tpu.dot_dimension_numbers<[1], [0], [0], [1], [0, 0, 1, 1], [], []>} : vector<8x32xf32>, vector<32x128xf32>, vector<8x128xf32> -> vector<8x128xf32>
    %c0_228 = arith.constant 0 : index
    %c0_229 = arith.constant 0 : index
    %c0_230 = arith.constant 0 : index
    %573 = vector.load %arg6[%c0_228, %c0_229, %c0_230] : memref<2x1x128xf32, #tpu.memory_space<vmem>>, vector<1x1x128xf32>
    %574 = vector.shape_cast %573 : vector<1x1x128xf32> to vector<1x128xf32>
    %575 = vector.broadcast %574 : vector<1x128xf32> to vector<8x128xf32>
    %576 = arith.addf %572, %575 : vector<8x128xf32>
    %577 = vector.extract_strided_slice %569 {offsets = [0, 0], sizes = [8, 32], strides = [1, 1]} : vector<8x128xf32> to vector<8x32xf32>
    %578 = vector.extract_strided_slice %576 {offsets = [0, 0], sizes = [8, 32], strides = [1, 1]} : vector<8x128xf32> to vector<8x32xf32>
    %579 = arith.addf %577, %578 : vector<8x32xf32>
    %580 = arith.negf %579 : vector<8x32xf32>
    %581 = math.exp %580 : vector<8x32xf32>
    %cst_231 = arith.constant 1.000000e+00 : f32
    %582 = vector.broadcast %cst_231 : f32 to vector<8x32xf32>
    %583 = arith.addf %582, %581 : vector<8x32xf32>
    %584 = arith.divf %582, %583 : vector<8x32xf32>
    %585 = vector.extract_strided_slice %569 {offsets = [0, 32], sizes = [8, 32], strides = [1, 1]} : vector<8x128xf32> to vector<8x32xf32>
    %586 = vector.extract_strided_slice %576 {offsets = [0, 32], sizes = [8, 32], strides = [1, 1]} : vector<8x128xf32> to vector<8x32xf32>
    %587 = arith.addf %585, %586 : vector<8x32xf32>
    %588 = arith.negf %587 : vector<8x32xf32>
    %589 = math.exp %588 : vector<8x32xf32>
    %cst_232 = arith.constant 1.000000e+00 : f32
    %590 = vector.broadcast %cst_232 : f32 to vector<8x32xf32>
    %591 = arith.addf %590, %589 : vector<8x32xf32>
    %592 = arith.divf %590, %591 : vector<8x32xf32>
    %593 = vector.extract_strided_slice %569 {offsets = [0, 64], sizes = [8, 32], strides = [1, 1]} : vector<8x128xf32> to vector<8x32xf32>
    %594 = vector.extract_strided_slice %576 {offsets = [0, 64], sizes = [8, 32], strides = [1, 1]} : vector<8x128xf32> to vector<8x32xf32>
    %595 = arith.mulf %584, %594 : vector<8x32xf32>
    %596 = arith.addf %593, %595 : vector<8x32xf32>
    %597 = math.tanh %596 : vector<8x32xf32>
    %cst_233 = arith.constant 1.000000e+00 : f32
    %598 = vector.broadcast %cst_233 : f32 to vector<8x32xf32>
    %599 = arith.subf %598, %592 : vector<8x32xf32>
    %600 = arith.mulf %599, %597 : vector<8x32xf32>
    %601 = arith.mulf %592, %522 : vector<8x32xf32>
    %602 = arith.addf %600, %601 : vector<8x32xf32>
    %c0_234 = arith.constant 0 : index
    %c0_235 = arith.constant 0 : index
    %c0_236 = arith.constant 0 : index
    %603 = vector.load %arg3[%c0_234, %c0_235, %c0_236] : memref<1x32x128xf32, #tpu.memory_space<vmem>>, vector<1x32x128xf32>
    %604 = vector.shape_cast %603 : vector<1x32x128xf32> to vector<32x128xf32>
    %cst_237 = arith.constant dense<0.000000e+00> : vector<8x128xf32>
    %605 = tpu.matmul %602, %604, %cst_237 {dimension_numbers = #tpu.dot_dimension_numbers<[1], [0], [0], [1], [0, 0, 1, 1], [], []>} : vector<8x32xf32>, vector<32x128xf32>, vector<8x128xf32> -> vector<8x128xf32>
    %c0_238 = arith.constant 0 : index
    %c0_239 = arith.constant 0 : index
    %c0_240 = arith.constant 0 : index
    %606 = vector.load %arg4[%c0_238, %c0_239, %c0_240] : memref<1x1x128xf32, #tpu.memory_space<vmem>>, vector<1x1x128xf32>
    %607 = vector.shape_cast %606 : vector<1x1x128xf32> to vector<1x128xf32>
    %608 = vector.broadcast %607 : vector<1x128xf32> to vector<8x128xf32>
    %609 = arith.addf %605, %608 : vector<8x128xf32>
    %c1_241 = arith.constant 1 : index
    %c0_242 = arith.constant 0 : index
    %c0_243 = arith.constant 0 : index
    %610 = vector.load %arg5[%c1_241, %c0_242, %c0_243] : memref<2x32x128xf32, #tpu.memory_space<vmem>>, vector<1x32x128xf32>
    %611 = vector.shape_cast %610 : vector<1x32x128xf32> to vector<32x128xf32>
    %cst_244 = arith.constant dense<0.000000e+00> : vector<8x128xf32>
    %612 = tpu.matmul %562, %611, %cst_244 {dimension_numbers = #tpu.dot_dimension_numbers<[1], [0], [0], [1], [0, 0, 1, 1], [], []>} : vector<8x32xf32>, vector<32x128xf32>, vector<8x128xf32> -> vector<8x128xf32>
    %c1_245 = arith.constant 1 : index
    %c0_246 = arith.constant 0 : index
    %c0_247 = arith.constant 0 : index
    %613 = vector.load %arg6[%c1_245, %c0_246, %c0_247] : memref<2x1x128xf32, #tpu.memory_space<vmem>>, vector<1x1x128xf32>
    %614 = vector.shape_cast %613 : vector<1x1x128xf32> to vector<1x128xf32>
    %615 = vector.broadcast %614 : vector<1x128xf32> to vector<8x128xf32>
    %616 = arith.addf %612, %615 : vector<8x128xf32>
    %617 = vector.extract_strided_slice %609 {offsets = [0, 0], sizes = [8, 32], strides = [1, 1]} : vector<8x128xf32> to vector<8x32xf32>
    %618 = vector.extract_strided_slice %616 {offsets = [0, 0], sizes = [8, 32], strides = [1, 1]} : vector<8x128xf32> to vector<8x32xf32>
    %619 = arith.addf %617, %618 : vector<8x32xf32>
    %620 = arith.negf %619 : vector<8x32xf32>
    %621 = math.exp %620 : vector<8x32xf32>
    %cst_248 = arith.constant 1.000000e+00 : f32
    %622 = vector.broadcast %cst_248 : f32 to vector<8x32xf32>
    %623 = arith.addf %622, %621 : vector<8x32xf32>
    %624 = arith.divf %622, %623 : vector<8x32xf32>
    %625 = vector.extract_strided_slice %609 {offsets = [0, 32], sizes = [8, 32], strides = [1, 1]} : vector<8x128xf32> to vector<8x32xf32>
    %626 = vector.extract_strided_slice %616 {offsets = [0, 32], sizes = [8, 32], strides = [1, 1]} : vector<8x128xf32> to vector<8x32xf32>
    %627 = arith.addf %625, %626 : vector<8x32xf32>
    %628 = arith.negf %627 : vector<8x32xf32>
    %629 = math.exp %628 : vector<8x32xf32>
    %cst_249 = arith.constant 1.000000e+00 : f32
    %630 = vector.broadcast %cst_249 : f32 to vector<8x32xf32>
    %631 = arith.addf %630, %629 : vector<8x32xf32>
    %632 = arith.divf %630, %631 : vector<8x32xf32>
    %633 = vector.extract_strided_slice %609 {offsets = [0, 64], sizes = [8, 32], strides = [1, 1]} : vector<8x128xf32> to vector<8x32xf32>
    %634 = vector.extract_strided_slice %616 {offsets = [0, 64], sizes = [8, 32], strides = [1, 1]} : vector<8x128xf32> to vector<8x32xf32>
    %635 = arith.mulf %624, %634 : vector<8x32xf32>
    %636 = arith.addf %633, %635 : vector<8x32xf32>
    %637 = math.tanh %636 : vector<8x32xf32>
    %cst_250 = arith.constant 1.000000e+00 : f32
    %638 = vector.broadcast %cst_250 : f32 to vector<8x32xf32>
    %639 = arith.subf %638, %632 : vector<8x32xf32>
    %640 = arith.mulf %639, %637 : vector<8x32xf32>
    %641 = arith.mulf %632, %562 : vector<8x32xf32>
    %642 = arith.addf %640, %641 : vector<8x32xf32>
    %643 = arith.index_cast %c7_i32 : i32 to index
    %c0_251 = arith.constant 0 : index
    %c0_252 = arith.constant 0 : index
    %644 = vector.load %arg7[%643, %c0_251, %c0_252] : memref<8x8x32xf32, #tpu.memory_space<vmem>>, vector<1x8x32xf32>
    %645 = vector.shape_cast %644 : vector<1x8x32xf32> to vector<8x32xf32>
    %646 = vector.shape_cast %642 : vector<8x32xf32> to vector<1x8x32xf32>
    tpu.vector_store %arg7[%643, %c0_251, %c0_252], %646 {strides = array<i32>} : memref<8x8x32xf32, #tpu.memory_space<vmem>>, vector<1x8x32xf32>,
    %c8_i32 = arith.constant 8 : i32
    %c0_253 = arith.constant 0 : index
    %c0_254 = arith.constant 0 : index
    %c0_255 = arith.constant 0 : index
    %647 = vector.load %arg8[%c0_253, %c0_254, %c0_255] : memref<2x8x32xf32, #tpu.memory_space<vmem>>, vector<1x8x32xf32>
    %648 = vector.shape_cast %647 : vector<1x8x32xf32> to vector<8x32xf32>
    %649 = vector.shape_cast %602 : vector<8x32xf32> to vector<1x8x32xf32>
    tpu.vector_store %arg8[%c0_253, %c0_254, %c0_255], %649 {strides = array<i32>} : memref<2x8x32xf32, #tpu.memory_space<vmem>>, vector<1x8x32xf32>,
    %c1_256 = arith.constant 1 : index
    %c0_257 = arith.constant 0 : index
    %c0_258 = arith.constant 0 : index
    %650 = vector.load %arg8[%c1_256, %c0_257, %c0_258] : memref<2x8x32xf32, #tpu.memory_space<vmem>>, vector<1x8x32xf32>
    %651 = vector.shape_cast %650 : vector<1x8x32xf32> to vector<8x32xf32>
    %652 = vector.shape_cast %642 : vector<8x32xf32> to vector<1x8x32xf32>
    tpu.vector_store %arg8[%c1_256, %c0_257, %c0_258], %652 {strides = array<i32>} : memref<2x8x32xf32, #tpu.memory_space<vmem>>, vector<1x8x32xf32>,
    return
  }
  func.func @transform_0(%arg0: i32, %arg1: i32) -> (i32, i32, i32) {
    %c0_i32 = arith.constant 0 : i32
    %c0_i32_0 = arith.constant 0 : i32
    return %arg1, %arg0, %c0_i32 : i32, i32, i32
  }
  func.func @transform_1(%arg0: i32, %arg1: i32) -> (i32, i32, i32) {
    %c0_i32 = arith.constant 0 : i32
    %c0_i32_0 = arith.constant 0 : i32
    %c0_i32_1 = arith.constant 0 : i32
    %c0_i32_2 = arith.constant 0 : i32
    return %c0_i32, %c0_i32_0, %c0_i32_1 : i32, i32, i32
  }
  func.func @transform_2(%arg0: i32, %arg1: i32) -> (i32, i32, i32) {
    %c0_i32 = arith.constant 0 : i32
    %c0_i32_0 = arith.constant 0 : i32
    %c0_i32_1 = arith.constant 0 : i32
    %c0_i32_2 = arith.constant 0 : i32
    return %c0_i32, %c0_i32_0, %c0_i32_1 : i32, i32, i32
  }
  func.func @transform_3(%arg0: i32, %arg1: i32) -> (i32, i32, i32) {
    %c0_i32 = arith.constant 0 : i32
    %c0_i32_0 = arith.constant 0 : i32
    %c0_i32_1 = arith.constant 0 : i32
    %c0_i32_2 = arith.constant 0 : i32
    return %c0_i32, %c0_i32_0, %c0_i32_1 : i32, i32, i32
  }
  func.func @transform_4(%arg0: i32, %arg1: i32) -> (i32, i32, i32) {
    %c0_i32 = arith.constant 0 : i32
    %c0_i32_0 = arith.constant 0 : i32
    %c0_i32_1 = arith.constant 0 : i32
    %c0_i32_2 = arith.constant 0 : i32
    return %c0_i32, %c0_i32_0, %c0_i32_1 : i32, i32, i32
  }
  func.func @transform_5(%arg0: i32, %arg1: i32) -> (i32, i32, i32) {
    %c0_i32 = arith.constant 0 : i32
    %c0_i32_0 = arith.constant 0 : i32
    return %arg1, %arg0, %c0_i32 : i32, i32, i32
  }
}

</mosaic_0001>

<bundles_post_ra>
// kernel: discriminator_forward.1
= control target key start
LH: loop header
LB: loop body
LE: loop exit
PB: predicated region body
PF: predicated region fallthrough
CT: control target
= control target key end

     0   :  { %vm24_vm0 = vcmask 261120   ;;  %v3131_v0 = vmov 0.0   ;;  %vm3132_vm1 = vmmov 0   ;;  %s3133_s28 = smov 64   ;;  %s3134_s20 = smov 96   ;;  %s3752_s3 = inlined_call_operand.vmem [shape: f32[2,32,128], index: 3, kind: input, shape index: {}]   ;;  %s3753_s4 = inlined_call_operand.vmem [shape: f32[2,1,128], index: 4, kind: input, shape index: {}]   ;;  %s3754_s0 = inlined_call_operand.vmem [shape: f32[8,8,128], index: 0, kind: input, shape index: {}]   ;;  %s3755_s1 = inlined_call_operand.vmem [shape: f32[1,32,128], index: 1, kind: input, shape index: {}]   ;;  %s3756_s2 = inlined_call_operand.vmem [shape: f32[1,1,128], index: 2, kind: input, shape index: {}]   ;;  %s3757_s5 = inlined_call_operand.vmem [shape: f32[8,8,32], index: 5, kind: output, shape index: {}]  }
   0x1   :  { %2766 = vmatprep.subr.mxu0 %v3131_v0  ;;  %v3170_v1 = vld [vmem:[%s3752_s3 + $0x18] sm:$0xff]  ;;  %v3175_v2 = vld [vmem:[%s3752_s3 + $0x10] sm:$0xff]  ;;  %2774 = vmatprep.mubr.msk.f32.mxu0 %vm3132_vm1, %v3131_v0  ;;  %25 = vst.msk [vmem:[#allocation2] sm:$0xff] %vm24_vm0, %v3131_v0  ;;  %26 = vst.msk [vmem:[#allocation2 + $0x8] sm:$0xff] %vm24_vm0, %v3131_v0  ;;  %s3135_s23 = smov 32  }
   0x2   :  { %2767 = vmatpush3.msra.mxu0 %v3170_v1  ;;  %2777 = vmatprep.subr.mxu1 %v3131_v0  ;;  %v3189_v3 = vld [vmem:[%s3752_s3 + $0x8] sm:$0xff]  ;;  %v3198_v4 = vld [vmem:[%s3752_s3] sm:$0xff]  ;;  %v3221_v20 = vld [vmem:[%s3752_s3 + $0x38] sm:$0xff] }
   0x3   :  { %2768 = vmatprep.subr.mxu0 %v3131_v0  ;;  %2785 = vmatprep.mubr.msk.f32.mxu1 %vm3132_vm1, %v3131_v0  ;;  %v3210_v6 = vld [vmem:[%s3753_s4] ss:$0 sm:$0xff]  ;;  %v3226_v21 = vld [vmem:[%s3752_s3 + $0x30] sm:$0xff]  ;;  %v3232_v22 = vld [vmem:[%s3755_s1 + $0x18] sm:$0xff] }
   0x4   :  { %2769 = vmatpush3.msra.mxu0 %v3175_v2  ;;  %v30_v10 = vld [vmem:[%s3754_s0] sm:$0xff]  ;;  %v3238_v23 = vld [vmem:[%s3752_s3 + $0x28] sm:$0xff]  ;;  %2778 = vmatpush3.msra.mxu1 %v3232_v22  ;;  %v3244_v24 = vld [vmem:[%s3755_s1 + $0x10] sm:$0xff] }
   0x5   :  { %2770 = vmatprep.subr.mxu0 %v3131_v0  ;;  %2779 = vmatprep.subr.mxu1 %v3131_v0  ;;  %v3252_v26 = vld [vmem:[%s3752_s3 + $0x20] sm:$0xff]  ;;  %v3258_v27 = vld [vmem:[%s3755_s1 + $0x8] sm:$0xff] }
   0x6   :  { %2771 = vmatpush3.msra.mxu0 %v3189_v3  ;;  %2780 = vmatpush3.msra.mxu1 %v3244_v24  ;;  %v3269_v29 = vld [vmem:[%s3755_s1] sm:$0xff]  ;;  %v2541_v55 = vld [vmem:[%s3754_s0 + $0x8] sm:$0xff] }
   0x7   :  { %2772 = vmatprep.subr.mxu0 %v3131_v0  ;;  %2781 = vmatprep.subr.mxu1 %v3131_v0  ;;  %v3297_v36 = vld [vmem:[%s3753_s4 + $0x1] ss:$0 sm:$0xff]  ;;  %v3326_v41 = vld [vmem:[%s3756_s2] ss:$0 sm:$0xff] }
   0x8   :  { %2773 = vmatpush3.msra.mxu0 %v3198_v4  ;;  %v27_v5 = vld [vmem:[#allocation2] sm:$0xff]  ;;  %v3262_v28 = vld [vmem:[#allocation2 + $0x8] sm:$0xff]  ;;  %2782 = vmatpush3.msra.mxu1 %v3258_v27 }
   0x9   :  { %2775 = vmatmul.mubr.msk.f32.vlgmr.msra.gmra.mxu0 %vm24_vm0, %v27_v5  ;;  %2788 = vmatprep.subr.mxu0 %v3131_v0 }
   0xa   :  { %2796 = vmatprep.mubr.msk.f32.mxu0 %vm3132_vm1, %v3131_v0  ;;  %2789 = vmatpush3.msra.mxu0 %v3221_v20 }
   0xb   :  { %2790 = vmatprep.subr.mxu0 %v3131_v0  ;;  %2783 = vmatprep.subr.mxu1 %v3131_v0 }
   0xc   :  { %2791 = vmatpush3.msra.mxu0 %v3226_v21  ;;  %2784 = vmatpush3.msra.mxu1 %v3269_v29 }
   0xd   :  { %2792 = vmatprep.subr.mxu0 %v3131_v0  ;;  %2799 = vmatprep.subr.mxu1 %v3131_v0 }
   0xe   :  { %2793 = vmatpush3.msra.mxu0 %v3238_v23 }
   0xf   :  { %2794 = vmatprep.subr.mxu0 %v3131_v0 }
  0x10   :  { %2795 = vmatpush3.msra.mxu0 %v3252_v26 }
  0x11   :  { %2797 = vmatmul.mubr.msk.f32.vlgmr.msra.gmra.mxu0 %vm24_vm0, %v3262_v28  ;;  %2810 = vmatprep.subr.mxu0 %v3131_v0 }
  0x12   :  { %2811 = vmatpush3.msra.mxu0 %v3232_v22  ;;  %2818 = vmatprep.mubr.msk.f32.mxu0 %vm3132_vm1, %v3131_v0 }
  0x13   :  { %2812 = vmatprep.subr.mxu0 %v3131_v0 }
  0x14   :  { %2813 = vmatpush3.msra.mxu0 %v3244_v24 }
  0x15   :  { %2814 = vmatprep.subr.mxu0 %v3131_v0 }
  0x16   :  { %2815 = vmatpush3.msra.mxu0 %v3258_v27 }
  0x17   :  { %2816 = vmatprep.subr.mxu0 %v3131_v0 }
  0x18   :  { %2817 = vmatpush3.msra.mxu0 %v3269_v29 }
  0x19   :  { %2832 = vmatprep.subr.mxu0 %v3131_v0 }
  0xc9   :  { %v112_v7 = vpop.f32.mrf.mxu0 }
  0xca   :  { %v113_v8 = vadd.f32 %v3210_v6, %v112_v7 }
  0xcb   :  { %v2776_v9 = vpop.f32.mrf.mxu0 }
  0xcc   :  { %124 = vrot.lane.b32.xlu0 %v113_v8, %s3133_s28  ;;  %v116_v11 = vadd.f32 %v113_v8, %v30_v10 }
  0xce   :  { %v2530_v12 = vmul.f32 -1.442695, %v116_v11 }
  0xd0   :  { %3035 = vpow2.f32 %v2530_v12 }
  0xd1   :  { %v313_v37 = vpop.f32.mrf.mxu0 }
  0xd2   :  { %v314_v38 = vadd.f32 %v3297_v36, %v313_v37 }
  0xd3   :  { %v2798_v39 = vpop.f32.mrf.mxu0 }
  0xdd   :  { %v3036_v13 = vpop.eup %3035 }
  0xde   :  { %v120_v14 = vadd.f32 1.0, %v3036_v13 }
  0xe0   :  { %3037 = vrcp.f32 %v120_v14 }
  0xed   :  { %v3038_v15 = vpop.eup %3037 }
  0xee   :  { %v134_v31 = vsub.f32 1.0, %v3038_v15 }
 0x13e   :  { %v125_v16 = vpop.permute.xlu0 %124 }
 0x13f   :  { %v127_v17 = vmul.f32 %v3038_v15, %v125_v16 }
 0x141   :  { %129 = vrot.lane.b32.xlu0 %v127_v17, %s3133_s28 }
 0x1b3   :  { %v130_v18 = vpop.permute.xlu0 %129 }
 0x1b4   :  { %v132_v19 = vadd.f32 %v130_v18, %v30_v10 }
 0x1b6   :  { %3039 = vtanh.f32 %v132_v19 }
 0x1c3   :  { %v3040_v25 = vpop.eup %3039 }
 0x1c4   :  { %136 = vrot.lane.b32.xlu1 %v3040_v25, %s3134_s20 }
 0x1c8   :  { %140 = vrot.lane.b32.xlu1 %v27_v5, %s3135_s23 }
 0x236   :  { %v137_v30 = vpop.permute.xlu1 %136 }
 0x237   :  { %v139_v33 = vmul.f32 %v137_v30, %v134_v31 }
 0x23a   :  { %v141_v32 = vpop.permute.xlu1 %140 }
 0x23b   :  { %v143_v34 = vmul.f32 %v3038_v15, %v141_v32 }
 0x23d   :  { %v3290_v35 = vadd.f32 %v143_v34, %v139_v33 }
 0x23f   :  { %157 = vrot.lane.b32.xlu0 %v3290_v35, %s3134_s20 }
 0x243   :  { %325 = vrot.lane.b32.xlu0 %v314_v38, %s3133_s28 }
 0x2b1   :  { %v158_v40 = vpop.permute.xlu0 %157 }
 0x2b2   :  { %2786 = vmatmul.mubr.msk.f32.vlgmr.msra.gmra.mxu1 %vm24_vm0, %v158_v40 }
 0x2b3   :  { %2800 = vmatpush3.msra.mxu1 %v3170_v1  ;;  %2807 = vmatprep.mubr.msk.f32.mxu1 %vm3132_vm1, %v3131_v0 }
 0x2b4   :  { %2801 = vmatprep.subr.mxu1 %v3131_v0 }
 0x2b5   :  { %2802 = vmatpush3.msra.mxu1 %v3175_v2  ;;  %v326_v52 = vpop.permute.xlu0 %325 }
 0x2b6   :  { %2803 = vmatprep.subr.mxu1 %v3131_v0 }
 0x2b7   :  { %2804 = vmatpush3.msra.mxu1 %v3189_v3 }
 0x2b8   :  { %2805 = vmatprep.subr.mxu1 %v3131_v0 }
 0x2b9   :  { %2806 = vmatpush3.msra.mxu1 %v3198_v4 }
 0x2ba   :  { %2808 = vmatmul.mubr.msk.f32.vlgmr.msra.gmra.mxu1 %vm24_vm0, %v158_v40  ;;  %2821 = vmatprep.subr.mxu1 %v3131_v0 }
 0x2bb   :  { %2822 = vmatpush3.msra.mxu1 %v3221_v20  ;;  %2829 = vmatprep.mubr.msk.f32.mxu1 %vm3132_vm1, %v3131_v0 }
 0x2bc   :  { %2823 = vmatprep.subr.mxu1 %v3131_v0 }
 0x2bd   :  { %2824 = vmatpush3.msra.mxu1 %v3226_v21 }
 0x2be   :  { %2825 = vmatprep.subr.mxu1 %v3131_v0 }
 0x2bf   :  { %2826 = vmatpush3.msra.mxu1 %v3238_v23 }
 0x2c0   :  { %2827 = vmatprep.subr.mxu1 %v3131_v0 }
 0x2c1   :  { %2828 = vmatpush3.msra.mxu1 %v3252_v26 }
 0x2c2   :  { %2843 = vmatprep.subr.mxu1 %v3131_v0 }
 0x372   :  { %v227_v42 = vpop.f32.mrf.mxu1 }
 0x373   :  { %v228_v43 = vadd.f32 %v3326_v41, %v227_v42 }
 0x374   :  { %v2787_v44 = vpop.f32.mrf.mxu1 }
 0x375   :  { %v317_v45 = vadd.f32 %v314_v38, %v228_v43  ;;  %v2556_v44 = vld [vmem:[%s3754_s0 + $0x10] sm:$0xff] }
 0x377   :  { %v2540_v46 = vmul.f32 -1.442695, %v317_v45 }
 0x379   :  { %3041 = vpow2.f32 %v2540_v46 }
 0x37a   :  { %v430_v47 = vpop.f32.mrf.mxu1 }
 0x37b   :  { %v431_v48 = vadd.f32 %v3210_v6, %v430_v47 }
 0x37c   :  { %v2809_v49 = vpop.f32.mrf.mxu1 }
 0x37d   :  { %442 = vrot.lane.b32.xlu1 %v431_v48, %s3133_s28  ;;  %v434_v56 = vadd.f32 %v2541_v55, %v431_v48 }
 0x37f   :  { %v2544_v57 = vmul.f32 -1.442695, %v434_v56 }
 0x386   :  { %v3042_v50 = vpop.eup %3041 }
 0x387   :  { %v321_v51 = vadd.f32 1.0, %v3042_v50 }
 0x389   :  { %3043 = vrcp.f32 %v321_v51 }
 0x38a   :  { %3045 = vpow2.f32 %v2544_v57 }
 0x396   :  { %v3044_v53 = vpop.eup %3043 }
 0x397   :  { %v328_v54 = vmul.f32 %v3044_v53, %v326_v52  ;;  %v3046_v58 = vpop.eup %3045  ;;  %v335_v16 = vsub.f32 1.0, %v3044_v53 }
 0x398   :  { %v438_v59 = vadd.f32 1.0, %v3046_v58 }
 0x399   :  { %330 = vrot.lane.b32.xlu0 %v328_v54, %s3133_s28 }
 0x39a   :  { %3047 = vrcp.f32 %v438_v59 }
 0x3a7   :  { %v3048_v60 = vpop.eup %3047 }
 0x3a8   :  { %v452_v11 = vsub.f32 1.0, %v3048_v60  ;;  %v458_v13 = vmul.f32 %v3048_v60, %v3290_v35 }
 0x3ef   :  { %v443_v61 = vpop.permute.xlu1 %442 }
 0x3f0   :  { %v445_v62 = vmul.f32 %v3048_v60, %v443_v61 }
 0x3f2   :  { %447 = vrot.lane.b32.xlu1 %v445_v62, %s3133_s28 }
 0x40b   :  { %v331_v63 = vpop.permute.xlu0 %330 }
 0x40c   :  { %v333_v5 = vadd.f32 %v331_v63, %v228_v43 }
 0x40e   :  { %3049 = vtanh.f32 %v333_v5 }
 0x41b   :  { %v3050_v7 = vpop.eup %3049 }
 0x41c   :  { %337 = vrot.lane.b32.xlu0 %v3050_v7, %s3134_s20 }
 0x464   :  { %v448_v8 = vpop.permute.xlu1 %447 }
 0x465   :  { %v450_v9 = vadd.f32 %v2541_v55, %v448_v8 }
 0x467   :  { %3051 = vtanh.f32 %v450_v9 }
 0x474   :  { %v3052_v10 = vpop.eup %3051 }
 0x475   :  { %454 = vrot.lane.b32.xlu1 %v3052_v10, %s3134_s20 }
 0x479   :  { %341 = vrot.lane.b32.xlu1 %v3262_v28, %s3135_s23 }
 0x48e   :  { %v338_v15 = vpop.permute.xlu0 %337 }
 0x48f   :  { %v340_v19 = vmul.f32 %v338_v15, %v335_v16 }
 0x4e7   :  { %v455_v12 = vpop.permute.xlu1 %454 }
 0x4e8   :  { %v457_v14 = vmul.f32 %v455_v12, %v452_v11 }
 0x4ea   :  { %v3341_v17 = vadd.f32 %v458_v13, %v457_v14 }
 0x4eb   :  { %v342_v18 = vpop.permute.xlu1 %341 }
 0x4ec   :  { %v344_v25 = vmul.f32 %v3044_v53, %v342_v18  ;;  %472 = vrot.lane.b32.xlu0 %v3341_v17, %s3134_s20 }
 0x4ee   :  { %v3345_v30 = vadd.f32 %v344_v25, %v340_v19 }
 0x4f0   :  { %347 = vrot.lane.b32.xlu1 %v3345_v30, %s3134_s20 }
 0x55e   :  { %v473_v28 = vpop.permute.xlu0 %472 }
 0x55f   :  { %2819 = vmatmul.mubr.msk.f32.vlgmr.msra.gmra.mxu0 %vm24_vm0, %v473_v28 }
 0x560   :  { %2833 = vmatpush3.msra.mxu0 %v3170_v1  ;;  %2840 = vmatprep.mubr.msk.f32.mxu0 %vm3132_vm1, %v3131_v0 }
 0x561   :  { %2834 = vmatprep.subr.mxu0 %v3131_v0 }
 0x562   :  { %2835 = vmatpush3.msra.mxu0 %v3175_v2  ;;  %v348_v31 = vpop.permute.xlu1 %347 }
 0x563   :  { %350 = vst.msk [vmem:[%s3757_s5] sm:$0xff] %vm24_vm0, %v348_v31  ;;  %2836 = vmatprep.subr.mxu0 %v3131_v0  ;;  %2830 = vmatmul.mubr.msk.f32.vlgmr.msra.gmra.mxu1 %vm24_vm0, %v348_v31 }
 0x564   :  { %2837 = vmatpush3.msra.mxu0 %v3189_v3  ;;  %2844 = vmatpush3.msra.mxu1 %v3232_v22 }
 0x565   :  { %2838 = vmatprep.subr.mxu0 %v3131_v0  ;;  %2845 = vmatprep.subr.mxu1 %v3131_v0 }
 0x566   :  { %2839 = vmatpush3.msra.mxu0 %v3198_v4  ;;  %2846 = vmatpush3.msra.mxu1 %v3244_v24 }
 0x567   :  { %2841 = vmatmul.mubr.msk.f32.vlgmr.msra.gmra.mxu0 %vm24_vm0, %v473_v28  ;;  %2854 = vmatprep.subr.mxu0 %v3131_v0 }
 0x568   :  { %2855 = vmatpush3.msra.mxu0 %v3221_v20  ;;  %2847 = vmatprep.subr.mxu1 %v3131_v0 }
 0x569   :  { %2856 = vmatprep.subr.mxu0 %v3131_v0  ;;  %2848 = vmatpush3.msra.mxu1 %v3258_v27 }
 0x56a   :  { %2857 = vmatpush3.msra.mxu0 %v3226_v21  ;;  %2862 = vmatprep.mubr.msk.f32.mxu0 %vm3132_vm1, %v3131_v0 }
 0x56b   :  { %2858 = vmatprep.subr.mxu0 %v3131_v0  ;;  %2849 = vmatprep.subr.mxu1 %v3131_v0 }
 0x56c   :  { %2859 = vmatpush3.msra.mxu0 %v3238_v23  ;;  %2850 = vmatpush3.msra.mxu1 %v3269_v29 }
 0x56d   :  { %2860 = vmatprep.subr.mxu0 %v3131_v0  ;;  %2851 = vmatprep.mubr.msk.f32.mxu1 %vm3132_vm1, %v3131_v0 }
 0x56e   :  { %2861 = vmatpush3.msra.mxu0 %v3252_v26  ;;  %2865 = vmatprep.subr.mxu1 %v3131_v0 }
 0x56f   :  { %2876 = vmatprep.subr.mxu0 %v3131_v0 }
 0x61f   :  { %v542_v32 = vpop.f32.mrf.mxu0 }
 0x620   :  { %v543_v42 = vadd.f32 %v3326_v41, %v542_v32 }
 0x621   :  { %v2820_v33 = vpop.f32.mrf.mxu0 }
 0x623   :  { %v625_v34 = vpop.f32.mrf.mxu1 }
 0x624   :  { %v626_v35 = vadd.f32 %v3297_v36, %v625_v34 }
 0x625   :  { %v2831_v37 = vpop.f32.mrf.mxu1 }
 0x626   :  { %637 = vrot.lane.b32.xlu1 %v626_v35, %s3133_s28  ;;  %v629_v43 = vadd.f32 %v626_v35, %v543_v42 }
 0x627   :  { %v740_v38 = vpop.f32.mrf.mxu0 }
 0x628   :  { %v741_v39 = vadd.f32 %v3210_v6, %v740_v38  ;;  %v2554_v45 = vmul.f32 -1.442695, %v629_v43  ;;  %v2571_v38 = vld [vmem:[%s3754_s0 + $0x18] sm:$0xff] }
 0x629   :  { %v2842_v40 = vpop.f32.mrf.mxu0 }
 0x62a   :  { %752 = vrot.lane.b32.xlu0 %v741_v39, %s3133_s28  ;;  %v744_v46 = vadd.f32 %v2556_v44, %v741_v39  ;;  %3053 = vpow2.f32 %v2554_v45 }
 0x62c   :  { %v2559_v47 = vmul.f32 -1.442695, %v744_v46 }
 0x62e   :  { %3055 = vpow2.f32 %v2559_v47 }
 0x637   :  { %v3054_v48 = vpop.eup %3053 }
 0x638   :  { %v633_v49 = vadd.f32 1.0, %v3054_v48 }
 0x63a   :  { %3057 = vrcp.f32 %v633_v49 }
 0x63b   :  { %v3056_v50 = vpop.eup %3055 }
 0x63c   :  { %v748_v51 = vadd.f32 1.0, %v3056_v50 }
 0x63e   :  { %3059 = vrcp.f32 %v748_v51 }
 0x647   :  { %v3058_v52 = vpop.eup %3057 }
 0x648   :  { %v647_v5 = vsub.f32 1.0, %v3058_v52  ;;  %v653_v8 = vmul.f32 %v3058_v52, %v3345_v30 }
 0x64b   :  { %v3060_v55 = vpop.eup %3059 }
 0x64c   :  { %v762_v11 = vsub.f32 1.0, %v3060_v55  ;;  %v768_v13 = vmul.f32 %v3060_v55, %v3341_v17 }
 0x698   :  { %v638_v53 = vpop.permute.xlu1 %637 }
 0x699   :  { %v640_v54 = vmul.f32 %v3058_v52, %v638_v53 }
 0x69b   :  { %642 = vrot.lane.b32.xlu1 %v640_v54, %s3133_s28 }
 0x69c   :  { %v753_v56 = vpop.permute.xlu0 %752 }
 0x69d   :  { %v755_v57 = vmul.f32 %v3060_v55, %v753_v56 }
 0x69f   :  { %757 = vrot.lane.b32.xlu0 %v755_v57, %s3133_s28 }
 0x70d   :  { %v643_v58 = vpop.permute.xlu1 %642 }
 0x70e   :  { %v645_v59 = vadd.f32 %v643_v58, %v543_v42 }
 0x710   :  { %3061 = vtanh.f32 %v645_v59 }
 0x711   :  { %v758_v60 = vpop.permute.xlu0 %757 }
 0x712   :  { %v760_v61 = vadd.f32 %v2556_v44, %v758_v60 }
 0x714   :  { %3063 = vtanh.f32 %v760_v61 }
 0x71d   :  { %v3062_v62 = vpop.eup %3061 }
 0x71e   :  { %649 = vrot.lane.b32.xlu1 %v3062_v62, %s3134_s20 }
 0x721   :  { %v3064_v63 = vpop.eup %3063 }
 0x722   :  { %764 = vrot.lane.b32.xlu0 %v3064_v63, %s3134_s20 }
 0x790   :  { %v650_v7 = vpop.permute.xlu1 %649 }
 0x791   :  { %v652_v9 = vmul.f32 %v650_v7, %v647_v5 }
 0x793   :  { %v3399_v10 = vadd.f32 %v653_v8, %v652_v9 }
 0x794   :  { %v765_v12 = vpop.permute.xlu0 %764 }
 0x795   :  { %v767_v14 = vmul.f32 %v765_v12, %v762_v11  ;;  %656 = vrot.lane.b32.xlu1 %v3399_v10, %s3134_s20 }
 0x797   :  { %v3404_v15 = vadd.f32 %v768_v13, %v767_v14 }
 0x799   :  { %782 = vrot.lane.b32.xlu0 %v3404_v15, %s3134_s20 }
 0x807   :  { %v657_v16 = vpop.permute.xlu1 %656 }
 0x808   :  { %2555 = vst.msk [vmem:[%s3757_s5 + $0x8] sm:$0xff] %vm24_vm0, %v657_v16  ;;  %2863 = vmatmul.mubr.msk.f32.vlgmr.msra.gmra.mxu0 %vm24_vm0, %v657_v16 }
 0x809   :  { %2877 = vmatpush3.msra.mxu0 %v3232_v22  ;;  %2884 = vmatprep.mubr.msk.f32.mxu0 %vm3132_vm1, %v3131_v0 }
 0x80a   :  { %2878 = vmatprep.subr.mxu0 %v3131_v0 }
 0x80b   :  { %v783_v17 = vpop.permute.xlu0 %782  ;;  %2879 = vmatpush3.msra.mxu0 %v3244_v24 }
 0x80c   :  { %2852 = vmatmul.mubr.msk.f32.vlgmr.msra.gmra.mxu1 %vm24_vm0, %v783_v17  ;;  %2880 = vmatprep.subr.mxu0 %v3131_v0 }
 0x80d   :  { %2866 = vmatpush3.msra.mxu1 %v3170_v1  ;;  %2873 = vmatprep.mubr.msk.f32.mxu1 %vm3132_vm1, %v3131_v0 }
 0x80e   :  { %2867 = vmatprep.subr.mxu1 %v3131_v0  ;;  %2881 = vmatpush3.msra.mxu0 %v3258_v27 }
 0x80f   :  { %2868 = vmatpush3.msra.mxu1 %v3175_v2  ;;  %2882 = vmatprep.subr.mxu0 %v3131_v0 }
 0x810   :  { %2869 = vmatprep.subr.mxu1 %v3131_v0  ;;  %2883 = vmatpush3.msra.mxu0 %v3269_v29 }
 0x811   :  { %2870 = vmatpush3.msra.mxu1 %v3189_v3  ;;  %2898 = vmatprep.subr.mxu0 %v3131_v0 }
 0x812   :  { %2871 = vmatprep.subr.mxu1 %v3131_v0 }
 0x813   :  { %2872 = vmatpush3.msra.mxu1 %v3198_v4 }
 0x814   :  { %2874 = vmatmul.mubr.msk.f32.vlgmr.msra.gmra.mxu1 %vm24_vm0, %v783_v17  ;;  %2887 = vmatprep.subr.mxu1 %v3131_v0 }
 0x815   :  { %2888 = vmatpush3.msra.mxu1 %v3221_v20  ;;  %2895 = vmatprep.mubr.msk.f32.mxu1 %vm3132_vm1, %v3131_v0 }
 0x816   :  { %2889 = vmatprep.subr.mxu1 %v3131_v0 }
 0x817   :  { %2890 = vmatpush3.msra.mxu1 %v3226_v21 }
 0x818   :  { %2891 = vmatprep.subr.mxu1 %v3131_v0 }
 0x819   :  { %2892 = vmatpush3.msra.mxu1 %v3238_v23 }
 0x81a   :  { %2893 = vmatprep.subr.mxu1 %v3131_v0 }
 0x81b   :  { %2894 = vmatpush3.msra.mxu1 %v3252_v26 }
 0x81c   :  { %2909 = vmatprep.subr.mxu1 %v3131_v0 }
 0x8c8   :  { %v935_v18 = vpop.f32.mrf.mxu0 }
 0x8c9   :  { %v936_v19 = vadd.f32 %v3297_v36, %v935_v18 }
 0x8ca   :  { %v2864_v25 = vpop.f32.mrf.mxu0 }
 0x8cb   :  { %947 = vrot.lane.b32.xlu1 %v936_v19, %s3133_s28 }
 0x8cc   :  { %v852_v30 = vpop.f32.mrf.mxu1 }
 0x8cd   :  { %v853_v34 = vadd.f32 %v3326_v41, %v852_v30 }
 0x8ce   :  { %v2853_v28 = vpop.f32.mrf.mxu1 }
 0x8cf   :  { %v939_v35 = vadd.f32 %v936_v19, %v853_v34 }
 0x8d1   :  { %v2569_v37 = vmul.f32 -1.442695, %v939_v35 }
 0x8d3   :  { %3065 = vpow2.f32 %v2569_v37 }
 0x8d4   :  { %v1050_v31 = vpop.f32.mrf.mxu1 }
 0x8d5   :  { %v1051_v32 = vadd.f32 %v3210_v6, %v1050_v31  ;;  %v2586_v31 = vld [vmem:[%s3754_s0 + $0x20] sm:$0xff] }
 0x8d6   :  { %v2875_v33 = vpop.f32.mrf.mxu1 }
 0x8d7   :  { %1062 = vrot.lane.b32.xlu0 %v1051_v32, %s3133_s28  ;;  %v1054_v39 = vadd.f32 %v2571_v38, %v1051_v32 }
 0x8d9   :  { %v2574_v40 = vmul.f32 -1.442695, %v1054_v39 }
 0x8db   :  { %3067 = vpow2.f32 %v2574_v40 }
 0x8e0   :  { %v3066_v42 = vpop.eup %3065 }
 0x8e1   :  { %v943_v43 = vadd.f32 1.0, %v3066_v42 }
 0x8e3   :  { %3069 = vrcp.f32 %v943_v43 }
 0x8e8   :  { %v3068_v44 = vpop.eup %3067 }
 0x8e9   :  { %v1058_v45 = vadd.f32 1.0, %v3068_v44 }
 0x8eb   :  { %3071 = vrcp.f32 %v1058_v45 }
 0x8f0   :  { %v3070_v46 = vpop.eup %3069 }
 0x8f1   :  { %v957_v58 = vsub.f32 1.0, %v3070_v46  ;;  %v963_v60 = vmul.f32 %v3070_v46, %v3399_v10 }
 0x8f8   :  { %v3072_v49 = vpop.eup %3071 }
 0x8f9   :  { %v1072_v63 = vsub.f32 1.0, %v3072_v49  ;;  %v1078_v7 = vmul.f32 %v3072_v49, %v3404_v15 }
 0x93d   :  { %v948_v47 = vpop.permute.xlu1 %947 }
 0x93e   :  { %v950_v48 = vmul.f32 %v3070_v46, %v948_v47 }
 0x940   :  { %952 = vrot.lane.b32.xlu1 %v950_v48, %s3133_s28 }
 0x949   :  { %v1063_v50 = vpop.permute.xlu0 %1062 }
 0x94a   :  { %v1065_v51 = vmul.f32 %v3072_v49, %v1063_v50 }
 0x94c   :  { %1067 = vrot.lane.b32.xlu0 %v1065_v51, %s3133_s28 }
 0x9b2   :  { %v953_v52 = vpop.permute.xlu1 %952 }
 0x9b3   :  { %v955_v53 = vadd.f32 %v953_v52, %v853_v34 }
 0x9b5   :  { %3073 = vtanh.f32 %v955_v53 }
 0x9be   :  { %v1068_v54 = vpop.permute.xlu0 %1067 }
 0x9bf   :  { %v1070_v55 = vadd.f32 %v2571_v38, %v1068_v54 }
 0x9c1   :  { %3075 = vtanh.f32 %v1070_v55 }
 0x9c2   :  { %v3074_v56 = vpop.eup %3073 }
 0x9c3   :  { %959 = vrot.lane.b32.xlu1 %v3074_v56, %s3134_s20 }
 0x9ce   :  { %v3076_v57 = vpop.eup %3075 }
 0x9cf   :  { %1074 = vrot.lane.b32.xlu0 %v3076_v57, %s3134_s20 }
 0xa35   :  { %v960_v59 = vpop.permute.xlu1 %959 }
 0xa36   :  { %v962_v61 = vmul.f32 %v960_v59, %v957_v58 }
 0xa38   :  { %v3458_v62 = vadd.f32 %v963_v60, %v962_v61 }
 0xa3a   :  { %966 = vrot.lane.b32.xlu1 %v3458_v62, %s3134_s20 }
 0xa41   :  { %v1075_v5 = vpop.permute.xlu0 %1074 }
 0xa42   :  { %v1077_v8 = vmul.f32 %v1075_v5, %v1072_v63 }
 0xa44   :  { %v3463_v9 = vadd.f32 %v1078_v7, %v1077_v8  ;;  %v2601_v7 = vld [vmem:[%s3754_s0 + $0x28] sm:$0xff] }
 0xa46   :  { %1092 = vrot.lane.b32.xlu0 %v3463_v9, %s3134_s20 }
 0xaac   :  { %v967_v11 = vpop.permute.xlu1 %966 }
 0xaad   :  { %2570 = vst.msk [vmem:[%s3757_s5 + $0x10] sm:$0xff] %vm24_vm0, %v967_v11  ;;  %2896 = vmatmul.mubr.msk.f32.vlgmr.msra.gmra.mxu1 %vm24_vm0, %v967_v11 }
 0xaae   :  { %2910 = vmatpush3.msra.mxu1 %v3232_v22  ;;  %2917 = vmatprep.mubr.msk.f32.mxu1 %vm3132_vm1, %v3131_v0 }
 0xaaf   :  { %2911 = vmatprep.subr.mxu1 %v3131_v0 }
 0xab0   :  { %2912 = vmatpush3.msra.mxu1 %v3244_v24 }
 0xab1   :  { %2913 = vmatprep.subr.mxu1 %v3131_v0 }
 0xab2   :  { %2914 = vmatpush3.msra.mxu1 %v3258_v27 }
 0xab3   :  { %2915 = vmatprep.subr.mxu1 %v3131_v0 }
 0xab4   :  { %2916 = vmatpush3.msra.mxu1 %v3269_v29 }
 0xab5   :  { %2931 = vmatprep.subr.mxu1 %v3131_v0 }
 0xab8   :  { %v1093_v10 = vpop.permute.xlu0 %1092 }
 0xab9   :  { %2885 = vmatmul.mubr.msk.f32.vlgmr.msra.gmra.mxu0 %vm24_vm0, %v1093_v10 }
 0xaba   :  { %2899 = vmatpush3.msra.mxu0 %v3170_v1  ;;  %2906 = vmatprep.mubr.msk.f32.mxu0 %vm3132_vm1, %v3131_v0 }
 0xabb   :  { %2900 = vmatprep.subr.mxu0 %v3131_v0 }
 0xabc   :  { %2901 = vmatpush3.msra.mxu0 %v3175_v2 }
 0xabd   :  { %2902 = vmatprep.subr.mxu0 %v3131_v0 }
 0xabe   :  { %2903 = vmatpush3.msra.mxu0 %v3189_v3 }
 0xabf   :  { %2904 = vmatprep.subr.mxu0 %v3131_v0 }
 0xac0   :  { %2905 = vmatpush3.msra.mxu0 %v3198_v4 }
 0xac1   :  { %2907 = vmatmul.mubr.msk.f32.vlgmr.msra.gmra.mxu0 %vm24_vm0, %v1093_v10  ;;  %2920 = vmatprep.subr.mxu0 %v3131_v0 }
 0xac2   :  { %2921 = vmatpush3.msra.mxu0 %v3221_v20  ;;  %2928 = vmatprep.mubr.msk.f32.mxu0 %vm3132_vm1, %v3131_v0 }
 0xac3   :  { %2922 = vmatprep.subr.mxu0 %v3131_v0 }
 0xac4   :  { %2923 = vmatpush3.msra.mxu0 %v3226_v21 }
 0xac5   :  { %2924 = vmatprep.subr.mxu0 %v3131_v0 }
 0xac6   :  { %2925 = vmatpush3.msra.mxu0 %v3238_v23 }
 0xac7   :  { %2926 = vmatprep.subr.mxu0 %v3131_v0 }
 0xac8   :  { %2927 = vmatpush3.msra.mxu0 %v3252_v26 }
 0xac9   :  { %2942 = vmatprep.subr.mxu0 %v3131_v0 }
 0xb6d   :  { %v1245_v12 = vpop.f32.mrf.mxu1 }
 0xb6e   :  { %v1246_v13 = vadd.f32 %v3297_v36, %v1245_v12 }
 0xb6f   :  { %v2897_v14 = vpop.f32.mrf.mxu1 }
 0xb70   :  { %1257 = vrot.lane.b32.xlu0 %v1246_v13, %s3133_s28 }
 0xb79   :  { %v1162_v15 = vpop.f32.mrf.mxu0 }
 0xb7a   :  { %v1163_v25 = vadd.f32 %v3326_v41, %v1162_v15 }
 0xb7b   :  { %v2886_v16 = vpop.f32.mrf.mxu0 }
 0xb7c   :  { %v1249_v30 = vadd.f32 %v1246_v13, %v1163_v25 }
 0xb7e   :  { %v2584_v28 = vmul.f32 -1.442695, %v1249_v30 }
 0xb80   :  { %3077 = vpow2.f32 %v2584_v28 }
 0xb81   :  { %v1360_v17 = vpop.f32.mrf.mxu0 }
 0xb82   :  { %v1361_v18 = vadd.f32 %v3210_v6, %v1360_v17 }
 0xb83   :  { %v2908_v19 = vpop.f32.mrf.mxu0 }
 0xb84   :  { %1372 = vrot.lane.b32.xlu1 %v1361_v18, %s3133_s28  ;;  %v1364_v32 = vadd.f32 %v2586_v31, %v1361_v18 }
 0xb86   :  { %v2589_v34 = vmul.f32 -1.442695, %v1364_v32 }
 0xb88   :  { %3079 = vpow2.f32 %v2589_v34 }
 0xb8d   :  { %v3078_v33 = vpop.eup %3077 }
 0xb8e   :  { %v1253_v35 = vadd.f32 1.0, %v3078_v33 }
 0xb90   :  { %3081 = vrcp.f32 %v1253_v35 }
 0xb95   :  { %v3080_v37 = vpop.eup %3079 }
 0xb96   :  { %v1368_v42 = vadd.f32 1.0, %v3080_v37 }
 0xb98   :  { %3083 = vrcp.f32 %v1368_v42 }
 0xb9d   :  { %v3082_v38 = vpop.eup %3081 }
 0xb9e   :  { %v1267_v52 = vsub.f32 1.0, %v3082_v38  ;;  %v1273_v54 = vmul.f32 %v3082_v38, %v3458_v62 }
 0xba5   :  { %v3084_v43 = vpop.eup %3083 }
 0xba6   :  { %v1382_v57 = vsub.f32 1.0, %v3084_v43  ;;  %v1388_v59 = vmul.f32 %v3084_v43, %v3463_v9 }
 0xbe2   :  { %v1258_v39 = vpop.permute.xlu0 %1257 }
 0xbe3   :  { %v1260_v40 = vmul.f32 %v3082_v38, %v1258_v39 }
 0xbe5   :  { %1262 = vrot.lane.b32.xlu0 %v1260_v40, %s3133_s28 }
 0xbf6   :  { %v1373_v44 = vpop.permute.xlu1 %1372 }
 0xbf7   :  { %v1375_v45 = vmul.f32 %v3084_v43, %v1373_v44  ;;  %v3595_v44 = vld [vmem:[%s3752_s3 + $0x18] sm:$0xff] }
 0xbf9   :  { %1377 = vrot.lane.b32.xlu1 %v1375_v45, %s3133_s28 }
 0xc57   :  { %v1263_v46 = vpop.permute.xlu0 %1262 }
 0xc58   :  { %v1265_v47 = vadd.f32 %v1263_v46, %v1163_v25  ;;  %v3601_v46 = vld [vmem:[%s3752_s3 + $0x10] sm:$0xff] }
 0xc5a   :  { %3085 = vtanh.f32 %v1265_v47  ;;  %v3610_v47 = vld [vmem:[%s3752_s3 + $0x8] sm:$0xff] }
 0xc67   :  { %v3086_v48 = vpop.eup %3085 }
 0xc68   :  { %1269 = vrot.lane.b32.xlu0 %v3086_v48, %s3134_s20  ;;  %v3617_v48 = vld [vmem:[%s3752_s3] sm:$0xff] }
 0xc6b   :  { %v1378_v49 = vpop.permute.xlu1 %1377 }
 0xc6c   :  { %v1380_v50 = vadd.f32 %v2586_v31, %v1378_v49 }
 0xc6e   :  { %3087 = vtanh.f32 %v1380_v50 }
 0xc7b   :  { %v3088_v51 = vpop.eup %3087 }
 0xc7c   :  { %1384 = vrot.lane.b32.xlu1 %v3088_v51, %s3134_s20 }
 0xcda   :  { %v1270_v53 = vpop.permute.xlu0 %1269 }
 0xcdb   :  { %v1272_v55 = vmul.f32 %v1270_v53, %v1267_v52 }
 0xcdd   :  { %v3517_v56 = vadd.f32 %v1273_v54, %v1272_v55  ;;  %v3631_v54 = vld [vmem:[%s3753_s4] ss:$0 sm:$0xff] }
 0xcdf   :  { %1276 = vrot.lane.b32.xlu0 %v3517_v56, %s3134_s20 }
 0xcee   :  { %v1385_v58 = vpop.permute.xlu1 %1384 }
 0xcef   :  { %v1387_v60 = vmul.f32 %v1385_v58, %v1382_v57 }
 0xcf1   :  { %v3522_v61 = vadd.f32 %v1388_v59, %v1387_v60 }
 0xcf3   :  { %1402 = vrot.lane.b32.xlu1 %v3522_v61, %s3134_s20 }
 0xd51   :  { %v1277_v63 = vpop.permute.xlu0 %1276 }
 0xd52   :  { %2585 = vst.msk [vmem:[%s3757_s5 + $0x18] sm:$0xff] %vm24_vm0, %v1277_v63  ;;  %2929 = vmatmul.mubr.msk.f32.vlgmr.msra.gmra.mxu0 %vm24_vm0, %v1277_v63  ;;  %v2616_v63 = vld [vmem:[%s3754_s0 + $0x30] sm:$0xff] }
 0xd53   :  { %2943 = vmatpush3.msra.mxu0 %v3232_v22  ;;  %2950 = vmatprep.mubr.msk.f32.mxu0 %vm3132_vm1, %v3131_v0 }
 0xd54   :  { %2944 = vmatprep.subr.mxu0 %v3131_v0 }
 0xd55   :  { %2945 = vmatpush3.msra.mxu0 %v3244_v24 }
 0xd56   :  { %2946 = vmatprep.subr.mxu0 %v3131_v0 }
 0xd57   :  { %2947 = vmatpush3.msra.mxu0 %v3258_v27 }
 0xd58   :  { %2948 = vmatprep.subr.mxu0 %v3131_v0 }
 0xd59   :  { %2949 = vmatpush3.msra.mxu0 %v3269_v29 }
 0xd5a   :  { %2964 = vmatprep.subr.mxu0 %v3131_v0 }
 0xd65   :  { %v1403_v62 = vpop.permute.xlu1 %1402 }
 0xd66   :  { %2918 = vmatmul.mubr.msk.f32.vlgmr.msra.gmra.mxu1 %vm24_vm0, %v1403_v62 }
 0xd67   :  { %2932 = vmatpush3.msra.mxu1 %v3170_v1  ;;  %2939 = vmatprep.mubr.msk.f32.mxu1 %vm3132_vm1, %v3131_v0 }
 0xd68   :  { %2933 = vmatprep.subr.mxu1 %v3131_v0 }
 0xd69   :  { %2934 = vmatpush3.msra.mxu1 %v3175_v2 }
 0xd6a   :  { %2935 = vmatprep.subr.mxu1 %v3131_v0 }
 0xd6b   :  { %2936 = vmatpush3.msra.mxu1 %v3189_v3 }
 0xd6c   :  { %2937 = vmatprep.subr.mxu1 %v3131_v0 }
 0xd6d   :  { %2938 = vmatpush3.msra.mxu1 %v3198_v4 }
 0xd6e   :  { %2940 = vmatmul.mubr.msk.f32.vlgmr.msra.gmra.mxu1 %vm24_vm0, %v1403_v62  ;;  %2953 = vmatprep.subr.mxu1 %v3131_v0 }
 0xd6f   :  { %2954 = vmatpush3.msra.mxu1 %v3221_v20  ;;  %2961 = vmatprep.mubr.msk.f32.mxu1 %vm3132_vm1, %v3131_v0 }
 0xd70   :  { %2955 = vmatprep.subr.mxu1 %v3131_v0 }
 0xd71   :  { %2956 = vmatpush3.msra.mxu1 %v3226_v21 }
 0xd72   :  { %2957 = vmatprep.subr.mxu1 %v3131_v0 }
 0xd73   :  { %2958 = vmatpush3.msra.mxu1 %v3238_v23 }
 0xd74   :  { %2959 = vmatprep.subr.mxu1 %v3131_v0 }
 0xd75   :  { %2960 = vmatpush3.msra.mxu1 %v3252_v26 }
 0xd76   :  { %2975 = vmatprep.subr.mxu1 %v3131_v0 }
 0xe12   :  { %v1555_v1 = vpop.f32.mrf.mxu0 }
 0xe13   :  { %v1556_v2 = vadd.f32 %v3297_v36, %v1555_v1 }
 0xe14   :  { %v2930_v3 = vpop.f32.mrf.mxu0 }
 0xe15   :  { %1567 = vrot.lane.b32.xlu0 %v1556_v2, %s3133_s28 }
 0xe26   :  { %v1472_v4 = vpop.f32.mrf.mxu1 }
 0xe27   :  { %v1473_v23 = vadd.f32 %v3326_v41, %v1472_v4 }
 0xe28   :  { %v2919_v20 = vpop.f32.mrf.mxu1 }
 0xe29   :  { %v1559_v27 = vadd.f32 %v1556_v2, %v1473_v23 }
 0xe2b   :  { %v2599_v26 = vmul.f32 -1.442695, %v1559_v27 }
 0xe2d   :  { %3089 = vpow2.f32 %v2599_v26 }
 0xe2e   :  { %v1670_v22 = vpop.f32.mrf.mxu1 }
 0xe2f   :  { %v1671_v21 = vadd.f32 %v3210_v6, %v1670_v22 }
 0xe30   :  { %v2941_v24 = vpop.f32.mrf.mxu1 }
 0xe31   :  { %1682 = vrot.lane.b32.xlu1 %v1671_v21, %s3133_s28  ;;  %v1674_v8 = vadd.f32 %v2601_v7, %v1671_v21 }
 0xe33   :  { %v2604_v9 = vmul.f32 -1.442695, %v1674_v8  ;;  %v2624_v8 = vld [vmem:[%s3752_s3 + $0x30] sm:$0xff] }
 0xe3a   :  { %v3090_v29 = vpop.eup %3089 }
 0xe3b   :  { %v1563_v5 = vadd.f32 1.0, %v3090_v29 }
 0xe3d   :  { %3091 = vrcp.f32 %v1563_v5 }
 0xe3e   :  { %3093 = vpow2.f32 %v2604_v9  ;;  %v2623_v9 = vld [vmem:[%s3752_s3 + $0x28] sm:$0xff] }
 0xe4a   :  { %v3092_v11 = vpop.eup %3091 }
 0xe4b   :  { %v3094_v12 = vpop.eup %3093  ;;  %v1577_v31 = vsub.f32 1.0, %v3092_v11  ;;  %v1583_v33 = vmul.f32 %v3092_v11, %v3517_v56 }
 0xe4c   :  { %v1678_v13 = vadd.f32 1.0, %v3094_v12  ;;  %v2012_v12 = vld [vmem:[%s3755_s1 + $0x10] sm:$0xff] }
 0xe4e   :  { %3095 = vrcp.f32 %v1678_v13  ;;  %v2011_v13 = vld [vmem:[%s3755_s1 + $0x8] sm:$0xff] }
 0xe5b   :  { %v3096_v14 = vpop.eup %3095 }
 0xe5c   :  { %v1692_v37 = vsub.f32 1.0, %v3096_v14  ;;  %v1698_v39 = vmul.f32 %v3096_v14, %v3522_v61 }
 0xe87   :  { %v1568_v6 = vpop.permute.xlu0 %1567 }
 0xe88   :  { %v1570_v10 = vmul.f32 %v3092_v11, %v1568_v6  ;;  %v2622_v11 = vld [vmem:[%s3752_s3 + $0x20] sm:$0xff] }
 0xe8a   :  { %1572 = vrot.lane.b32.xlu0 %v1570_v10, %s3133_s28  ;;  %v2013_v10 = vld [vmem:[%s3755_s1 + $0x18] sm:$0xff] }
 0xea3   :  { %v1683_v15 = vpop.permute.xlu1 %1682 }
 0xea4   :  { %v1685_v16 = vmul.f32 %v3096_v14, %v1683_v15  ;;  %v2010_v14 = vld [vmem:[%s3755_s1] sm:$0xff] }
 0xea6   :  { %1687 = vrot.lane.b32.xlu1 %v1685_v16, %s3133_s28 }
 0xefc   :  { %v1573_v17 = vpop.permute.xlu0 %1572 }
 0xefd   :  { %v1575_v18 = vadd.f32 %v1573_v17, %v1473_v23 }
 0xeff   :  { %3097 = vtanh.f32 %v1575_v18 }
 0xf0c   :  { %v3098_v19 = vpop.eup %3097 }
 0xf0d   :  { %1579 = vrot.lane.b32.xlu0 %v3098_v19, %s3134_s20 }
 0xf18   :  { %v1688_v25 = vpop.permute.xlu1 %1687 }
 0xf19   :  { %v1690_v30 = vadd.f32 %v2601_v7, %v1688_v25  ;;  %v2625_v7 = vld [vmem:[%s3752_s3 + $0x38] sm:$0xff] }
 0xf1b   :  { %3099 = vtanh.f32 %v1690_v30 }
 0xf28   :  { %v3100_v28 = vpop.eup %3099 }
 0xf29   :  { %1694 = vrot.lane.b32.xlu1 %v3100_v28, %s3134_s20 }
 0xf7f   :  { %v1580_v32 = vpop.permute.xlu0 %1579 }
 0xf80   :  { %v1582_v34 = vmul.f32 %v1580_v32, %v1577_v31 }
 0xf82   :  { %v3576_v35 = vadd.f32 %v1583_v33, %v1582_v34 }
 0xf84   :  { %1586 = vrot.lane.b32.xlu0 %v3576_v35, %s3134_s20 }
 0xf9b   :  { %v1695_v38 = vpop.permute.xlu1 %1694 }
 0xf9c   :  { %v1697_v40 = vmul.f32 %v1695_v38, %v1692_v37 }
 0xf9e   :  { %v3581_v42 = vadd.f32 %v1698_v39, %v1697_v40 }
 0xfa0   :  { %1712 = vrot.lane.b32.xlu1 %v3581_v42, %s3134_s20 }
 0xff6   :  { %v1587_v43 = vpop.permute.xlu0 %1586 }
 0xff7   :  { %2600 = vst.msk [vmem:[%s3757_s5 + $0x20] sm:$0xff] %vm24_vm0, %v1587_v43  ;;  %2962 = vmatmul.mubr.msk.f32.vlgmr.msra.gmra.mxu1 %vm24_vm0, %v1587_v43 }
 0xff8   :  { %2983 = vmatprep.mubr.msk.f32.mxu1 %vm3132_vm1, %v3131_v0  ;;  %2976 = vmatpush3.msra.mxu1 %v2013_v10 }
 0xff9   :  { %2977 = vmatprep.subr.mxu1 %v3131_v0 }
 0xffa   :  { %2978 = vmatpush3.msra.mxu1 %v2012_v12 }
 0xffb   :  { %2979 = vmatprep.subr.mxu1 %v3131_v0 }
 0xffc   :  { %2980 = vmatpush3.msra.mxu1 %v2011_v13 }
 0xffd   :  { %2981 = vmatprep.subr.mxu1 %v3131_v0 }
 0xffe   :  { %2982 = vmatpush3.msra.mxu1 %v2010_v14 }
 0xfff   :  { %2997 = vmatprep.subr.mxu1 %v3131_v0 }
0x1012   :  { %v1713_v45 = vpop.permute.xlu1 %1712 }
0x1013   :  { %2951 = vmatmul.mubr.msk.f32.vlgmr.msra.gmra.mxu0 %vm24_vm0, %v1713_v45 }
0x1014   :  { %2965 = vmatpush3.msra.mxu0 %v3595_v44  ;;  %2972 = vmatprep.mubr.msk.f32.mxu0 %vm3132_vm1, %v3131_v0 }
0x1015   :  { %2966 = vmatprep.subr.mxu0 %v3131_v0 }
0x1016   :  { %2967 = vmatpush3.msra.mxu0 %v3601_v46 }
0x1017   :  { %2968 = vmatprep.subr.mxu0 %v3131_v0 }
0x1018   :  { %2969 = vmatpush3.msra.mxu0 %v3610_v47 }
0x1019   :  { %2970 = vmatprep.subr.mxu0 %v3131_v0 }
0x101a   :  { %2971 = vmatpush3.msra.mxu0 %v3617_v48 }
0x101b   :  { %2973 = vmatmul.mubr.msk.f32.vlgmr.msra.gmra.mxu0 %vm24_vm0, %v1713_v45  ;;  %2986 = vmatprep.subr.mxu0 %v3131_v0 }
0x101c   :  { %2994 = vmatprep.mubr.msk.f32.mxu0 %vm3132_vm1, %v3131_v0  ;;  %2987 = vmatpush3.msra.mxu0 %v2625_v7 }
0x101d   :  { %2988 = vmatprep.subr.mxu0 %v3131_v0 }
0x101e   :  { %2989 = vmatpush3.msra.mxu0 %v2624_v8 }
0x101f   :  { %2990 = vmatprep.subr.mxu0 %v3131_v0 }
0x1020   :  { %2991 = vmatpush3.msra.mxu0 %v2623_v9 }
0x1021   :  { %2992 = vmatprep.subr.mxu0 %v3131_v0 }
0x1022   :  { %2993 = vmatpush3.msra.mxu0 %v2622_v11 }
0x1023   :  { %3008 = vmatprep.subr.mxu0 %v3131_v0 }
0x10b7   :  { %v1865_v49 = vpop.f32.mrf.mxu1 }
0x10b8   :  { %v1866_v50 = vadd.f32 %v3297_v36, %v1865_v49 }
0x10b9   :  { %v2963_v51 = vpop.f32.mrf.mxu1 }
0x10ba   :  { %1877 = vrot.lane.b32.xlu0 %v1866_v50, %s3133_s28 }
0x10d3   :  { %v1782_v52 = vpop.f32.mrf.mxu0 }
0x10d4   :  { %v1783_v58 = vadd.f32 %v3326_v41, %v1782_v52  ;;  %v2631_v52 = vld [vmem:[%s3754_s0 + $0x38] sm:$0xff] }
0x10d5   :  { %v2952_v53 = vpop.f32.mrf.mxu0 }
0x10d6   :  { %v1869_v59 = vadd.f32 %v1866_v50, %v1783_v58 }
0x10d8   :  { %v2614_v36 = vmul.f32 -1.442695, %v1869_v59 }
0x10da   :  { %3101 = vpow2.f32 %v2614_v36 }
0x10db   :  { %v1980_v55 = vpop.f32.mrf.mxu0 }
0x10dc   :  { %v1981_v56 = vadd.f32 %v3631_v54, %v1980_v55 }
0x10dd   :  { %v2974_v57 = vpop.f32.mrf.mxu0 }
0x10de   :  { %1992 = vrot.lane.b32.xlu1 %v1981_v56, %s3133_s28  ;;  %v1984_v62 = vadd.f32 %v2616_v63, %v1981_v56 }
0x10e0   :  { %v2619_v1 = vmul.f32 -1.442695, %v1984_v62 }
0x10e7   :  { %v3102_v60 = vpop.eup %3101 }
0x10e8   :  { %v1873_v61 = vadd.f32 1.0, %v3102_v60 }
0x10ea   :  { %3103 = vrcp.f32 %v1873_v61 }
0x10eb   :  { %3105 = vpow2.f32 %v2619_v1 }
0x10f7   :  { %v3104_v2 = vpop.eup %3103 }
0x10f8   :  { %v3106_v20 = vpop.eup %3105  ;;  %v1887_v15 = vsub.f32 1.0, %v3104_v2  ;;  %v1893_v17 = vmul.f32 %v3104_v2, %v3576_v35  ;;  %v3715_v35 = vld [vmem:[%s3753_s4 + $0x1] ss:$0 sm:$0xff] }
0x10f9   :  { %v1988_v41 = vadd.f32 1.0, %v3106_v20 }
0x10fb   :  { %3107 = vrcp.f32 %v1988_v41 }
0x1108   :  { %v3108_v22 = vpop.eup %3107 }
0x1109   :  { %v2002_v25 = vsub.f32 1.0, %v3108_v22  ;;  %v2008_v28 = vmul.f32 %v3108_v22, %v3581_v42 }
0x112c   :  { %v1878_v3 = vpop.permute.xlu0 %1877 }
0x112d   :  { %v1880_v4 = vmul.f32 %v3104_v2, %v1878_v3 }
0x112f   :  { %1882 = vrot.lane.b32.xlu0 %v1880_v4, %s3133_s28 }
0x1150   :  { %v1993_v21 = vpop.permute.xlu1 %1992 }
0x1151   :  { %v1995_v24 = vmul.f32 %v3108_v22, %v1993_v21 }
0x1153   :  { %1997 = vrot.lane.b32.xlu1 %v1995_v24, %s3133_s28 }
0x11a1   :  { %v1883_v23 = vpop.permute.xlu0 %1882 }
0x11a2   :  { %v1885_v27 = vadd.f32 %v1883_v23, %v1783_v58 }
0x11a4   :  { %3109 = vtanh.f32 %v1885_v27 }
0x11b1   :  { %v3110_v26 = vpop.eup %3109 }
0x11b2   :  { %1889 = vrot.lane.b32.xlu0 %v3110_v26, %s3134_s20 }
0x11c5   :  { %v1998_v29 = vpop.permute.xlu1 %1997 }
0x11c6   :  { %v2000_v5 = vadd.f32 %v2616_v63, %v1998_v29 }
0x11c8   :  { %3111 = vtanh.f32 %v2000_v5 }
0x11d5   :  { %v3112_v6 = vpop.eup %3111 }
0x11d6   :  { %2004 = vrot.lane.b32.xlu1 %v3112_v6, %s3134_s20 }
0x1224   :  { %v1890_v16 = vpop.permute.xlu0 %1889 }
0x1225   :  { %v1892_v18 = vmul.f32 %v1890_v16, %v1887_v15 }
0x1227   :  { %v3676_v19 = vadd.f32 %v1893_v17, %v1892_v18 }
0x1229   :  { %1896 = vrot.lane.b32.xlu0 %v3676_v19, %s3134_s20 }
0x1248   :  { %v2005_v30 = vpop.permute.xlu1 %2004 }
0x1249   :  { %v2007_v31 = vmul.f32 %v2005_v30, %v2002_v25 }
0x124b   :  { %v3681_v32 = vadd.f32 %v2008_v28, %v2007_v31 }
0x124d   :  { %2022 = vrot.lane.b32.xlu1 %v3681_v32, %s3134_s20 }
0x129b   :  { %v1897_v33 = vpop.permute.xlu0 %1896 }
0x129c   :  { %2615 = vst.msk [vmem:[%s3757_s5 + $0x28] sm:$0xff] %vm24_vm0, %v1897_v33  ;;  %2995 = vmatmul.mubr.msk.f32.vlgmr.msra.gmra.mxu0 %vm24_vm0, %v1897_v33 }
0x129d   :  { %3009 = vmatpush3.msra.mxu0 %v2013_v10  ;;  %3016 = vmatprep.mubr.msk.f32.mxu0 %vm3132_vm1, %v3131_v0 }
0x129e   :  { %3010 = vmatprep.subr.mxu0 %v3131_v0 }
0x129f   :  { %3011 = vmatpush3.msra.mxu0 %v2012_v12 }
0x12a0   :  { %3012 = vmatprep.subr.mxu0 %v3131_v0 }
0x12a1   :  { %3013 = vmatpush3.msra.mxu0 %v2011_v13 }
0x12a2   :  { %3014 = vmatprep.subr.mxu0 %v3131_v0 }
0x12a3   :  { %3015 = vmatpush3.msra.mxu0 %v2010_v14 }
0x12bf   :  { %v2023_v34 = vpop.permute.xlu1 %2022 }
0x12c0   :  { %2984 = vmatmul.mubr.msk.f32.vlgmr.msra.gmra.mxu1 %vm24_vm0, %v2023_v34 }
0x12c1   :  { %2998 = vmatpush3.msra.mxu1 %v3595_v44  ;;  %3005 = vmatprep.mubr.msk.f32.mxu1 %vm3132_vm1, %v3131_v0 }
0x12c2   :  { %2999 = vmatprep.subr.mxu1 %v3131_v0 }
0x12c3   :  { %3000 = vmatpush3.msra.mxu1 %v3601_v46 }
0x12c4   :  { %3001 = vmatprep.subr.mxu1 %v3131_v0 }
0x12c5   :  { %3002 = vmatpush3.msra.mxu1 %v3610_v47 }
0x12c6   :  { %3003 = vmatprep.subr.mxu1 %v3131_v0 }
0x12c7   :  { %3004 = vmatpush3.msra.mxu1 %v3617_v48 }
0x12c8   :  { %3006 = vmatmul.mubr.msk.f32.vlgmr.msra.gmra.mxu1 %vm24_vm0, %v2023_v34  ;;  %3019 = vmatprep.subr.mxu1 %v3131_v0 }
0x12c9   :  { %3020 = vmatpush3.msra.mxu1 %v2625_v7  ;;  %3027 = vmatprep.mubr.msk.f32.mxu1 %vm3132_vm1, %v3131_v0 }
0x12ca   :  { %3021 = vmatprep.subr.mxu1 %v3131_v0 }
0x12cb   :  { %3022 = vmatpush3.msra.mxu1 %v2624_v8 }
0x12cc   :  { %3023 = vmatprep.subr.mxu1 %v3131_v0 }
0x12cd   :  { %3024 = vmatpush3.msra.mxu1 %v2623_v9 }
0x12ce   :  { %3025 = vmatprep.subr.mxu1 %v3131_v0  ;;  %v2620_v0 = vld [vmem:[%s3756_s2] ss:$0 sm:$0xff] }
0x12cf   :  { %3026 = vmatpush3.msra.mxu1 %v2622_v11 }
0x135c   :  { %v2175_v37 = vpop.f32.mrf.mxu0 }
0x135d   :  { %v2176_v38 = vadd.f32 %v3715_v35, %v2175_v37 }
0x135e   :  { %v2996_v39 = vpop.f32.mrf.mxu0 }
0x135f   :  { %2187 = vrot.lane.b32.xlu0 %v2176_v38, %s3133_s28 }
0x1380   :  { %v2092_v40 = vpop.f32.mrf.mxu1 }
0x1381   :  { %v2093_v46 = vadd.f32 %v2620_v0, %v2092_v40 }
0x1382   :  { %v2985_v42 = vpop.f32.mrf.mxu1 }
0x1383   :  { %v2179_v47 = vadd.f32 %v2176_v38, %v2093_v46 }
0x1385   :  { %v2629_v48 = vmul.f32 -1.442695, %v2179_v47 }
0x1387   :  { %3113 = vpow2.f32 %v2629_v48 }
0x1388   :  { %v2290_v43 = vpop.f32.mrf.mxu1 }
0x1389   :  { %v2291_v44 = vadd.f32 %v3631_v54, %v2290_v43 }
0x138a   :  { %v3007_v45 = vpop.f32.mrf.mxu1 }
0x138b   :  { %2302 = vrot.lane.b32.xlu1 %v2291_v44, %s3133_s28  ;;  %v2294_v55 = vadd.f32 %v2631_v52, %v2291_v44 }
0x138d   :  { %v2634_v56 = vmul.f32 -1.442695, %v2294_v55 }
0x1394   :  { %v3114_v49 = vpop.eup %3113 }
0x1395   :  { %v2183_v50 = vadd.f32 1.0, %v3114_v49 }
0x1397   :  { %3115 = vrcp.f32 %v2183_v50 }
0x1398   :  { %3117 = vpow2.f32 %v2634_v56 }
0x13a4   :  { %v3116_v51 = vpop.eup %3115 }
0x13a5   :  { %v3118_v57 = vpop.eup %3117  ;;  %v2197_v4 = vsub.f32 1.0, %v3116_v51  ;;  %v2203_v41 = vmul.f32 %v3116_v51, %v3676_v19 }
0x13a6   :  { %v2298_v58 = vadd.f32 1.0, %v3118_v57 }
0x13a8   :  { %3119 = vrcp.f32 %v2298_v58 }
0x13b5   :  { %v3120_v59 = vpop.eup %3119 }
0x13b6   :  { %v2312_v24 = vsub.f32 1.0, %v3120_v59  ;;  %v2318_v27 = vmul.f32 %v3120_v59, %v3681_v32 }
0x13d1   :  { %v2188_v53 = vpop.permute.xlu0 %2187 }
0x13d2   :  { %v2190_v54 = vmul.f32 %v3116_v51, %v2188_v53 }
0x13d4   :  { %2192 = vrot.lane.b32.xlu0 %v2190_v54, %s3133_s28 }
0x13fd   :  { %v2303_v36 = vpop.permute.xlu1 %2302 }
0x13fe   :  { %v2305_v60 = vmul.f32 %v3120_v59, %v2303_v36 }
0x1400   :  { %2307 = vrot.lane.b32.xlu1 %v2305_v60, %s3133_s28 }
0x1446   :  { %v2193_v61 = vpop.permute.xlu0 %2192 }
0x1447   :  { %v2195_v63 = vadd.f32 %v2193_v61, %v2093_v46 }
0x1449   :  { %3121 = vtanh.f32 %v2195_v63 }
0x1456   :  { %v3122_v62 = vpop.eup %3121 }
0x1457   :  { %2199 = vrot.lane.b32.xlu0 %v3122_v62, %s3134_s20 }
0x1472   :  { %v2308_v1 = vpop.permute.xlu1 %2307 }
0x1473   :  { %v2310_v2 = vadd.f32 %v2631_v52, %v2308_v1 }
0x1475   :  { %3123 = vtanh.f32 %v2310_v2 }
0x1482   :  { %v3124_v3 = vpop.eup %3123 }
0x1483   :  { %2314 = vrot.lane.b32.xlu1 %v3124_v3, %s3134_s20 }
0x14c9   :  { %v2200_v20 = vpop.permute.xlu0 %2199 }
0x14ca   :  { %v2202_v22 = vmul.f32 %v2200_v20, %v2197_v4 }
0x14cc   :  { %v2204_v21 = vadd.f32 %v2203_v41, %v2202_v22 }
0x14ce   :  { %2206 = vrot.lane.b32.xlu0 %v2204_v21, %s3134_s20 }
0x14f5   :  { %v2315_v23 = vpop.permute.xlu1 %2314 }
0x14f6   :  { %v2317_v26 = vmul.f32 %v2315_v23, %v2312_v24 }
0x14f8   :  { %v2319_v29 = vadd.f32 %v2318_v27, %v2317_v26 }
0x14fa   :  { %2332 = vrot.lane.b32.xlu1 %v2319_v29, %s3134_s20 }
0x1540   :  { %v2207_v5 = vpop.permute.xlu0 %2206 }
0x1541   :  { %2630 = vst.msk [vmem:[%s3757_s5 + $0x30] sm:$0xff] %vm24_vm0, %v2207_v5  ;;  %3028 = vmatmul.mubr.msk.f32.vlgmr.msra.gmra.mxu1 %vm24_vm0, %v2207_v5 }
0x156c   :  { %v2333_v7 = vpop.permute.xlu1 %2332 }
0x156d   :  { %2522 = vst.msk [vmem:[#allocation2] sm:$0xff] %vm24_vm0, %v2333_v7  ;;  %3017 = vmatmul.mubr.msk.f32.vlgmr.msra.gmra.mxu0 %vm24_vm0, %v2333_v7 }
0x1601   :  { %v2485_v8 = vpop.f32.mrf.mxu1 }
0x1602   :  { %v2486_v9 = vadd.f32 %v3715_v35, %v2485_v8 }
0x1603   :  { %v3029_v11 = vpop.f32.mrf.mxu1 }
0x1604   :  { %2497 = vrot.lane.b32.xlu0 %v2486_v9, %s3133_s28 }
0x162d   :  { %v2402_v6 = vpop.f32.mrf.mxu0 }
0x162e   :  { %v2403_v12 = vadd.f32 %v2620_v0, %v2402_v6 }
0x162f   :  { %v3018_v10 = vpop.f32.mrf.mxu0 }
0x1630   :  { %v2489_v13 = vadd.f32 %v2486_v9, %v2403_v12 }
0x1632   :  { %v2644_v14 = vmul.f32 -1.442695, %v2489_v13 }
0x1634   :  { %3125 = vpow2.f32 %v2644_v14 }
0x1641   :  { %v3126_v15 = vpop.eup %3125 }
0x1642   :  { %v2493_v16 = vadd.f32 1.0, %v3126_v15 }
0x1644   :  { %3127 = vrcp.f32 %v2493_v16 }
0x1651   :  { %v3128_v17 = vpop.eup %3127 }
0x1652   :  { %v2507_v31 = vsub.f32 1.0, %v3128_v17  ;;  %v2513_v33 = vmul.f32 %v3128_v17, %v2204_v21 }
0x1676   :  { %v2498_v18 = vpop.permute.xlu0 %2497 }
0x1677   :  { %v2500_v19 = vmul.f32 %v3128_v17, %v2498_v18 }
0x1679   :  { %2502 = vrot.lane.b32.xlu1 %v2500_v19, %s3133_s28 }
0x16eb   :  { %v2503_v25 = vpop.permute.xlu1 %2502 }
0x16ec   :  { %v2505_v30 = vadd.f32 %v2503_v25, %v2403_v12 }
0x16ee   :  { %3129 = vtanh.f32 %v2505_v30 }
0x16fb   :  { %v3130_v28 = vpop.eup %3129 }
0x16fc   :  { %2509 = vrot.lane.b32.xlu0 %v3130_v28, %s3134_s20 }
0x176e   :  { %v2510_v32 = vpop.permute.xlu0 %2509 }
0x176f   :  { %v2512_v34 = vmul.f32 %v2510_v32, %v2507_v31 }
0x1771   :  { %v2514_v35 = vadd.f32 %v2513_v33, %v2512_v34 }
0x1773   :  { %2516 = vrot.lane.b32.xlu1 %v2514_v35, %s3134_s20 }
0x17e5   :  { %v2517_v37 = vpop.permute.xlu1 %2516 }
0x17e6   :  { %2645 = vst.msk [vmem:[%s3757_s5 + $0x38] sm:$0xff] %vm24_vm0, %v2517_v37  ;;  %2523 = vst.msk [vmem:[#allocation2 + $0x8] sm:$0xff] %vm24_vm0, %v2517_v37 }

</bundles_post_ra>
